<compile_context>
chip_gen: v7x
topology: tpu7x:2x2x1
jax: 0.10.0
libtpu: 0.0.40
codegen_flags: <defaults>
</compile_context>

<pallas_src>
import functools

import jax
import jax.numpy as jnp
import numpy as np
from jax.experimental import pallas as pl
from jax.experimental.pallas import tpu as pltpu


def _round_up(x, m):
    return (x + m - 1) // m * m


def _vmem_limit_bytes():
    # ~3/4 of physical VMEM: ~96 MiB on v5e/v6e, ~48 MiB on v7x.
    try:
        cap = pltpu.get_tpu_info().vmem_capacity_bytes
    except Exception:
        cap = 128 * 1024 * 1024
    return int(min(max(cap * 3 // 4, 32 * 1024 * 1024), 100 * 1024 * 1024))


def _weight_spec(a, single_buffer):
    nd = a.ndim
    index_map = lambda *_args, _nd=nd: (0,) * _nd
    if single_buffer:
        try:
            # Grid-invariant operand: no need to double-buffer it in VMEM.
            return pl.BlockSpec(a.shape, index_map, pipeline_mode=pl.Buffered(1))
        except TypeError:
            pass
    return pl.BlockSpec(a.shape, index_map)


# ---------------------------------------------------------------------------
# Fused Layer kernel: one (batch, L-tile) grid step = both BasicBlocks.
# ---------------------------------------------------------------------------
def _layer_kernel(cfg, x_ref, *refs):
    downsample = cfg["downsample"]
    if downsample:
        (w1_ref, b1_ref, w1b_ref, b1b_ref, wd_ref, bd_ref,
         w2a_ref, b2a_ref, w2b_ref, b2b_ref, out_ref) = refs
    else:
        (w1_ref, b1_ref, w1b_ref, b1b_ref,
         w2a_ref, b2a_ref, w2b_ref, b2b_ref, out_ref) = refs

    k, p, k1, s = cfg["k"], cfg["p"], cfg["k1"], cfg["s"]
    tl, l1 = cfg["tl"], cfg["l1"]
    cin, cout_p = cfg["cin"], cfg["cout_p"]
    in_rows = cfg["in_rows"]
    mxu = cfg["mxu_dtype"]

    r1 = tl + 6 * p            # block1.conv1 rows held for this tile (with halo)
    r2 = tl + 4 * p            # block1 output / shortcut rows
    r3 = tl + 2 * p            # block2.conv1 rows

    t = pl.program_id(1)
    g0 = t * tl                                     # global row of this tile's first output
    row0 = pl.multiple_of(t * tl, 8)
    x = x_ref[0, pl.ds(row0, in_rows), :]           # (in_rows, s*cin), bf16

    def conv(xv, w_ref, b_ref, kk, rows):
        """Stride-1 conv: one deep MXU dot (contraction kk*C) when the lane
        dim is 128-aligned, else a short static tap loop (tiny-Cin conv1)."""
        c = xv.shape[1]
        if kk > 1 and c % 128 == 0:
            taps = jnp.concatenate([xv[u:u + rows, :] for u in range(kk)], axis=1)
            acc = jnp.dot(taps, w_ref[...], preferred_element_type=jnp.float32)
        else:
            w = w_ref[...]
            acc = jnp.dot(xv[0:rows, :], w[0:c, :],
                          preferred_element_type=jnp.float32)
            for u in range(1, kk):
                acc = acc + jnp.dot(xv[u:u + rows, :], w[u * c:(u + 1) * c, :],
                                    preferred_element_type=jnp.float32)
        return acc + b_ref[...]

    def mask_rows(v, g_start, rows):
        # Halo rows (global index outside [0, L1)) must be exactly zero before
        # feeding the next conv (zero-padding semantics of each Conv1d).
        if p == 0:
            return v
        gi = g_start + jax.lax.broadcasted_iota(jnp.int32, (rows, 1), 0)
        return jnp.where((gi >= 0) & (gi < l1), v, 0.0)

    # ---- block1.conv1 + bn1 (stride already folded into the phase layout) --
    h1 = mask_rows(conv(x, w1_ref, b1_ref, k1, r1), g0 - 3 * p, r1)
    # ---- block1.conv2 + bn2 — NOTE: no ReLU in between (matches reference) -
    h2 = conv(h1.astype(mxu), w1b_ref, b1b_ref, k, r2)

    # ---- block1 shortcut ----------------------------------------------------
    c0 = (p % s) * cin
    sc = x[p + p // s:p + p // s + r2, c0:c0 + cin]
    if downsample:                                   # Conv1d(k=1, stride=2) + BN
        sc = jnp.dot(sc, wd_ref[...],
                     preferred_element_type=jnp.float32) + bd_ref[...]
    else:                                            # identity (cin == cout)
        sc = sc.astype(jnp.float32)
        if cin < cout_p:
            sc = jnp.concatenate(
                [sc, jnp.zeros((r2, cout_p - cin), jnp.float32)], axis=1)
    y1 = mask_rows(jnp.maximum(h2 + sc, 0.0), g0 - 2 * p, r2)

    # ---- block2 (stride 1, identity shortcut) ------------------------------
    y1b = y1.astype(mxu)
    g1 = mask_rows(conv(y1b, w2a_ref, b2a_ref, k, r3), g0 - p, r3)
    g2 = conv(g1.astype(mxu), w2b_ref, b2b_ref, k, tl)
    out = jnp.maximum(g2 + y1[2 * p:2 * p + tl, :], 0.0)
    out_ref[0, :, :] = out.astype(out_ref.dtype)


# ---------------------------------------------------------------------------
# Host-side parameter preparation (BN folding, padding, weight re-layout)
# ---------------------------------------------------------------------------
def fold_conv_bn(w, b, gamma, beta, mean, var, eps=1e-5):
    """Fold eval-mode BatchNorm1d into the preceding Conv1d.
    w: (Cout, Cin, k) PyTorch layout -> (k, Cin, Cout); bias (Cout,)."""
    scale = gamma / jnp.sqrt(var + eps)
    wf = jnp.transpose(w, (2, 1, 0)) * scale[None, None, :]
    bf = (b - mean) * scale + beta
    return wf.astype(jnp.float32), bf.astype(jnp.float32)


def prepare_layer_params(raw, *, kernel_size, stride, downsample,
                         mxu_dtype=jnp.bfloat16):
    """BN-fold + re-layout all Layer weights for the fused kernel.

    Output channels (hence all intermediate activations) are zero-padded to a
    multiple of 128 lanes; conv1 is re-expressed as a stride-1 conv over the
    stride-de-interleaved "phase" input; every stride-1 conv weight is
    flattened to (k*Cin, Cout_p) so the kernel issues a single deep MXU dot.
    """
    k, s = kernel_size, stride
    k1 = (k - 1) // s + 1
    b1, b2 = raw["block1"], raw["block2"]

    w1a, bias1a = fold_conv_bn(b1["conv1_w"], b1["conv1_b"], **b1["bn1"])
    cin, cout = w1a.shape[1], w1a.shape[2]
    cout_p = _round_up(cout, 128)
    cin_eff = s * cin

    if downsample:
        assert s == 2, "PyTorch hard-codes the downsample conv to stride 2"
    else:
        assert s == 1 and cin == cout, "identity shortcut needs stride=1, cin==cout"

    def pad_out(a):            # zero-pad the output-channel (lane) axis
        return jnp.pad(a, [(0, 0)] * (a.ndim - 1) + [(0, cout_p - cout)])

    def bias2d(bv):
        return pad_out(bv).reshape(1, cout_p).astype(jnp.float32)

    # conv1: (k, cin, cout) -> phase-expanded (k1, s, cin, cout) -> (k1*s*cin, cout_p)
    w1p = jnp.zeros((k1, s, cin, cout), jnp.float32)
    for j in range(k):
        w1p = w1p.at[j // s, j % s].set(w1a[j])
    w1 = pad_out(w1p.reshape(k1 * cin_eff, cout)).astype(mxu_dtype)

    def s1_weight(wf):         # (k, c_in, cout) -> (k*cout_p, cout_p)
        c_in = wf.shape[1]
        wz = jnp.pad(wf, ((0, 0), (0, cout_p - c_in), (0, cout_p - cout)))
        return wz.reshape(k * cout_p, cout_p).astype(mxu_dtype)

    w1b, bias1b = fold_conv_bn(b1["conv2_w"], b1["conv2_b"], **b1["bn2"])
    w2a, bias2a = fold_conv_bn(b2["conv1_w"], b2["conv1_b"], **b2["bn1"])
    w2b, bias2b = fold_conv_bn(b2["conv2_w"], b2["conv2_b"], **b2["bn2"])

    params = dict(
        cin=cin, cout=cout, cout_p=cout_p, cin_eff=cin_eff,
        kernel_size=k, stride=s, downsample=downsample, k1=k1,
        mxu_dtype=mxu_dtype,
        w1=w1, b1=bias2d(bias1a),
        w1b=s1_weight(w1b), b1b=bias2d(bias1b),
        w2a=s1_weight(w2a), b2a=bias2d(bias2a),
        w2b=s1_weight(w2b), b2b=bias2d(bias2b),
    )
    if downsample:
        wd, biasd = fold_conv_bn(b1["convd_w"], b1["convd_b"], **b1["bnd"])
        params["wd"] = pad_out(wd[0]).astype(mxu_dtype)        # (cin, cout_p)
        params["bd"] = bias2d(biasd)
    return params


# ---------------------------------------------------------------------------
# Wrappers
# ---------------------------------------------------------------------------
def layer_forward_cl(x_cl, params, *, tl_max=512, out_dtype=jnp.float32):
    """Fused `Layer` forward (inference) on a channels-last activation.

    x_cl: (B, L, Cin) -> (B, L1, Cout), channels-last so successive layers
    chain without per-layer transposes.
    """
    B, L, cin = x_cl.shape
    assert cin == params["cin"]
    k = params["kernel_size"]
    s = params["stride"]
    p = k // 2
    k1 = params["k1"]
    cout, cout_p, cin_eff = params["cout"], params["cout_p"], params["cin_eff"]
    downsample = params["downsample"]
    mxu_dtype = params["mxu_dtype"]

    l1 = (L + 2 * p - k) // s + 1
    tl = min(_round_up(l1, 8), tl_max)
    n_t = pl.cdiv(l1, tl)
    in_rows = _round_up(tl + 6 * p + k1 - 1, 8)
    lh_hbm = (n_t - 1) * tl + in_rows

    # One channels-last pass over the input: conv zero-padding + halo margin +
    # stride de-interleave ("phase" layout: row m holds original rows
    # s*m .. s*m+s-1 as s channel blocks).  Every conv in the kernel is then a
    # dense stride-1 matmul; no k-fold tap duplication in HBM.
    left = 3 * p * s + p
    total = s * lh_hbm
    right = total - left - L
    assert right >= 0
    x_ph = jnp.pad(x_cl.astype(mxu_dtype), ((0, 0), (left, right), (0, 0)))
    x_ph = x_ph.reshape(B, lh_hbm, cin_eff)

    weight_names = ["w1", "b1", "w1b", "b1b"]
    if downsample:
        weight_names += ["wd", "bd"]
    weight_names += ["w2a", "b2a", "w2b", "b2b"]
    weights = [params[n] for n in weight_names]

    cfg = dict(downsample=downsample, k=k, p=p, k1=k1, s=s, tl=tl, l1=l1,
               cin=cin, cin_eff=cin_eff, cout_p=cout_p, in_rows=in_rows,
               mxu_dtype=mxu_dtype)
    kernel = functools.partial(_layer_kernel, cfg)

    flops = 2 * B * l1 * (k1 * cin_eff * cout_p + 3 * k * cout_p * cout_p)
    if downsample:
        flops += 2 * B * l1 * cin * cout_p
    bytes_accessed = (int(x_ph.size) * x_ph.dtype.itemsize
                      + sum(int(a.size) * a.dtype.itemsize for a in weights)
                      + B * n_t * tl * cout_p * 4)

    def run(single_buffer_weights):
        in_specs = [pl.BlockSpec((1, lh_hbm, cin_eff), lambda b, t: (b, 0, 0))]
        in_specs += [_weight_spec(a, single_buffer_weights) for a in weights]
        return pl.pallas_call(
            kernel,
            out_shape=jax.ShapeDtypeStruct((B, n_t * tl, cout_p), jnp.float32),
            grid=(B, n_t),
            in_specs=in_specs,
            out_specs=pl.BlockSpec((1, tl, cout_p), lambda b, t: (b, t, 0)),
            compiler_params=pltpu.CompilerParams(
                dimension_semantics=("parallel", "parallel"),
                vmem_limit_bytes=_vmem_limit_bytes()),
            cost_estimate=pl.CostEstimate(flops=flops, transcendentals=0,
                                          bytes_accessed=bytes_accessed),
        )(x_ph, *weights)

    try:
        out = run(True)            # grid-invariant weights single-buffered
    except Exception:              # pl.Buffered(1) unsupported here -> default
        out = run(False)

    return out[:, :l1, :cout].astype(out_dtype)


def layer_forward(x, params, **kw):
    """(B, Cin, L) -> (B, Cout, L1): NCL interface matching the PyTorch module."""
    y = layer_forward_cl(jnp.transpose(x, (0, 2, 1)), params, **kw)
    return jnp.transpose(y, (0, 2, 1))


# ---------------------------------------------------------------------------
# Deterministic parameter construction + pure-JAX reference for validation
# ---------------------------------------------------------------------------
def _init_basic_block(key, cin, cout, k, downsample):
    ks = jax.random.split(key, 10)

    def nrm(kk, shape, s=0.1):
        return jax.random.normal(kk, shape, jnp.float32) * s

    def bn(kk, c):
        b0, b1, b2, b3 = jax.random.split(kk, 4)
        return dict(gamma=1.0 + nrm(b0, (c,)), beta=nrm(b1, (c,)),
                    mean=nrm(b2, (c,)), var=jnp.abs(nrm(b3, (c,), 1.0)) + 0.5)

    blk = dict(
        conv1_w=nrm(ks[0], (cout, cin, k)), conv1_b=nrm(ks[1], (cout,)),
        bn1=bn(ks[2], cout),
        conv2_w=nrm(ks[3], (cout, cout, k)), conv2_b=nrm(ks[4], (cout,)),
        bn2=bn(ks[5], cout),
    )
    if downsample:
        blk["convd_w"] = nrm(ks[6], (cout, cin, 1))
        blk["convd_b"] = nrm(ks[7], (cout,))
        blk["bnd"] = bn(ks[8], cout)
    return blk


def init_layer_params(key, cin, cout, k, downsample):
    k1, k2 = jax.random.split(key)
    return dict(block1=_init_basic_block(k1, cin, cout, k, downsample),
                block2=_init_basic_block(k2, cout, cout, k, False))


def _ref_conv1d(x, w, b, stride, padding):
    y = jax.lax.conv_general_dilated(
        x, w, window_strides=(stride,), padding=[(padding, padding)],
        dimension_numbers=("NCH", "OIH", "NCH"),
        precision=jax.lax.Precision.HIGHEST)
    return y + b[None, :, None]


def _ref_bn(x, gamma, beta, mean, var, eps=1e-5):
    inv = gamma / jnp.sqrt(var + eps)
    return (x - mean[None, :, None]) * inv[None, :, None] + beta[None, :, None]


def _ref_basic_block(x, blk, k, stride, downsample):
    h = _ref_conv1d(x, blk["conv1_w"], blk["conv1_b"], stride, k // 2)
    h = _ref_bn(h, **blk["bn1"])
    h = _ref_conv1d(h, blk["conv2_w"], blk["conv2_b"], 1, k // 2)
    h = _ref_bn(h, **blk["bn2"])
    if downsample:
        sc = _ref_conv1d(x, blk["convd_w"], blk["convd_b"], 2, 0)
        sc = _ref_bn(sc, **blk["bnd"])
    else:
        sc = x
    return jnp.maximum(h + sc, 0.0)


def ref_layer(x, raw, k, stride, downsample):
    y = _ref_basic_block(x, raw["block1"], k, stride, downsample)
    return _ref_basic_block(y, raw["block2"], k, 1, False)


# ---------------------------------------------------------------------------
if __name__ == "__main__":
    B, CIN, COUT, L, K = 2, 4, 32, 16, 3

    key = jax.random.PRNGKey(0)
    kx, kp1, kp2 = jax.random.split(key, 3)
    x = jax.random.normal(kx, (B, CIN, L), jnp.float32)

    # Layer 1: 4 -> 32 channels, stride 2, downsample shortcut.
    raw1 = init_layer_params(kp1, CIN, COUT, K, downsample=True)
    # Layer 2: 32 -> 32 channels, stride 1, identity shortcut.
    raw2 = init_layer_params(kp2, COUT, COUT, K, downsample=False)
    prm1 = prepare_layer_params(raw1, kernel_size=K, stride=2, downsample=True)
    prm2 = prepare_layer_params(raw2, kernel_size=K, stride=1, downsample=False)

    # Chain the layers in channels-last; transpose only at network entry/exit.
    x_cl = jnp.transpose(x, (0, 2, 1))
    y1_cl = layer_forward_cl(x_cl, prm1)
    y2_cl = layer_forward_cl(y1_cl, prm2)
    y2 = jnp.transpose(y2_cl, (0, 2, 1))
    y2 = jax.block_until_ready(y2)

    assert y1_cl.shape == (B, L // 2, COUT)
    assert y2.shape == (B, COUT, L // 2)

    # Cross-check against a pure-JAX/XLA (f32, HIGHEST-precision) reference of
    # the PyTorch module.  Tolerance reflects bf16 MXU operands in the kernel.
    r1 = ref_layer(x, raw1, K, 2, True)
    r2 = ref_layer(r1, raw2, K, 1, False)
    np.testing.assert_allclose(np.asarray(y2), np.asarray(r2),
                               atol=3e-2, rtol=3e-2)

    print("KERNEL_OK")
</pallas_src>

<mosaic_0001>
module attributes {stable_mosaic.version = 11 : i64} {
  func.func @_layer_kernel(%arg0: i32, %arg1: i32, %arg2: memref<1x16x8xbf16, #tpu.memory_space<vmem>>, %arg3: memref<16x128xbf16, #tpu.memory_space<vmem>>, %arg4: memref<1x128xf32, #tpu.memory_space<vmem>>, %arg5: memref<384x128xbf16, #tpu.memory_space<vmem>>, %arg6: memref<1x128xf32, #tpu.memory_space<vmem>>, %arg7: memref<4x128xbf16, #tpu.memory_space<vmem>>, %arg8: memref<1x128xf32, #tpu.memory_space<vmem>>, %arg9: memref<384x128xbf16, #tpu.memory_space<vmem>>, %arg10: memref<1x128xf32, #tpu.memory_space<vmem>>, %arg11: memref<384x128xbf16, #tpu.memory_space<vmem>>, %arg12: memref<1x128xf32, #tpu.memory_space<vmem>>, %arg13: memref<1x8x128xf32, #tpu.memory_space<vmem>>) attributes {dimension_semantics = [#tpu.dimension_semantics<parallel>, #tpu.dimension_semantics<parallel>], iteration_bounds = array<i64: 2, 1>, scalar_prefetch = 0 : i64, scratch_operands = 0 : i64, tpu.core_type = #tpu.core_type<tc>, window_params = [{transform_indices = @transform_0, window_bounds = array<i64: 1, 16, 8>}, {pipeline_mode = #tpu.pipeline_mode<synchronous>, transform_indices = @transform_1, window_bounds = array<i64: 16, 128>}, {pipeline_mode = #tpu.pipeline_mode<synchronous>, transform_indices = @transform_2, window_bounds = array<i64: 1, 128>}, {pipeline_mode = #tpu.pipeline_mode<synchronous>, transform_indices = @transform_3, window_bounds = array<i64: 384, 128>}, {pipeline_mode = #tpu.pipeline_mode<synchronous>, transform_indices = @transform_4, window_bounds = array<i64: 1, 128>}, {pipeline_mode = #tpu.pipeline_mode<synchronous>, transform_indices = @transform_5, window_bounds = array<i64: 4, 128>}, {pipeline_mode = #tpu.pipeline_mode<synchronous>, transform_indices = @transform_6, window_bounds = array<i64: 1, 128>}, {pipeline_mode = #tpu.pipeline_mode<synchronous>, transform_indices = @transform_7, window_bounds = array<i64: 384, 128>}, {pipeline_mode = #tpu.pipeline_mode<synchronous>, transform_indices = @transform_8, window_bounds = array<i64: 1, 128>}, {pipeline_mode = #tpu.pipeline_mode<synchronous>, transform_indices = @transform_9, window_bounds = array<i64: 384, 128>}, {pipeline_mode = #tpu.pipeline_mode<synchronous>, transform_indices = @transform_10, window_bounds = array<i64: 1, 128>}, {transform_indices = @transform_11, window_bounds = array<i64: 1, 8, 128>}]} {
    %c8_i32 = arith.constant 8 : i32
    %0 = arith.muli %arg1, %c8_i32 : i32
    %c8_i32_0 = arith.constant 8 : i32
    %1 = arith.muli %arg1, %c8_i32_0 : i32
    %2 = tpu.assume_multiple %1, 8 : i32
    %c0 = arith.constant 0 : index
    %3 = arith.index_cast %2 : i32 to index
    %c0_1 = arith.constant 0 : index
    %4 = vector.load %arg2[%c0, %3, %c0_1] : memref<1x16x8xbf16, #tpu.memory_space<vmem>>, vector<1x16x8xbf16>
    %5 = vector.shape_cast %4 : vector<1x16x8xbf16> to vector<16x8xbf16>
    %c0_2 = arith.constant 0 : index
    %c0_3 = arith.constant 0 : index
    %6 = vector.load %arg3[%c0_2, %c0_3] : memref<16x128xbf16, #tpu.memory_space<vmem>>, vector<16x128xbf16>
    %7 = vector.extract_strided_slice %5 {offsets = [0, 0], sizes = [14, 8], strides = [1, 1]} : vector<16x8xbf16> to vector<14x8xbf16>
    %8 = vector.extract_strided_slice %6 {offsets = [0, 0], sizes = [8, 128], strides = [1, 1]} : vector<16x128xbf16> to vector<8x128xbf16>
    %cst = arith.constant dense<0.000000e+00> : vector<14x128xf32>
    %9 = tpu.matmul %7, %8, %cst {dimension_numbers = #tpu.dot_dimension_numbers<[1], [0], [0], [1], [0, 0, 1, 1], [], []>} : vector<14x8xbf16>, vector<8x128xbf16>, vector<14x128xf32> -> vector<14x128xf32>
    %10 = vector.extract_strided_slice %5 {offsets = [1, 0], sizes = [14, 8], strides = [1, 1]} : vector<16x8xbf16> to vector<14x8xbf16>
    %11 = vector.extract_strided_slice %6 {offsets = [8, 0], sizes = [8, 128], strides = [1, 1]} : vector<16x128xbf16> to vector<8x128xbf16>
    %cst_4 = arith.constant dense<0.000000e+00> : vector<14x128xf32>
    %12 = tpu.matmul %10, %11, %cst_4 {dimension_numbers = #tpu.dot_dimension_numbers<[1], [0], [0], [1], [0, 0, 1, 1], [], []>} : vector<14x8xbf16>, vector<8x128xbf16>, vector<14x128xf32> -> vector<14x128xf32>
    %13 = arith.addf %9, %12 : vector<14x128xf32>
    %c0_5 = arith.constant 0 : index
    %c0_6 = arith.constant 0 : index
    %14 = vector.load %arg4[%c0_5, %c0_6] : memref<1x128xf32, #tpu.memory_space<vmem>>, vector<1x128xf32>
    %15 = vector.broadcast %14 : vector<1x128xf32> to vector<14x128xf32>
    %16 = arith.addf %13, %15 : vector<14x128xf32>
    %c3_i32 = arith.constant 3 : i32
    %17 = arith.subi %0, %c3_i32 : i32
    %18 = tpu.iota {dimensions = array<i32: 0>} : vector<14x1xi32>
    %19 = vector.broadcast %17 : i32 to vector<14x1xi32>
    %20 = arith.addi %19, %18 : vector<14x1xi32>
    %c0_i32 = arith.constant 0 : i32
    %21 = vector.broadcast %c0_i32 : i32 to vector<14x1xi32>
    %22 = arith.cmpi sge, %20, %21 : vector<14x1xi32>
    %c8_i32_7 = arith.constant 8 : i32
    %23 = vector.broadcast %c8_i32_7 : i32 to vector<14x1xi32>
    %24 = arith.cmpi slt, %20, %23 : vector<14x1xi32>
    %25 = arith.andi %22, %24 : vector<14x1xi1>
    %cst_8 = arith.constant 0.000000e+00 : f32
    %26 = vector.shape_cast %25 : vector<14x1xi1> to vector<14x1xi1>
    %27 = vector.broadcast %26 : vector<14x1xi1> to vector<14x128xi1>
    %28 = vector.broadcast %cst_8 : f32 to vector<14x128xf32>
    %29 = arith.select %27, %16, %28 : vector<14x128xi1>, vector<14x128xf32>
    %30 = arith.truncf %29 : vector<14x128xf32> to vector<14x128xbf16>
    %31 = vector.extract_strided_slice %30 {offsets = [0, 0], sizes = [12, 128], strides = [1, 1]} : vector<14x128xbf16> to vector<12x128xbf16>
    %32 = vector.extract_strided_slice %30 {offsets = [1, 0], sizes = [12, 128], strides = [1, 1]} : vector<14x128xbf16> to vector<12x128xbf16>
    %33 = vector.extract_strided_slice %30 {offsets = [2, 0], sizes = [12, 128], strides = [1, 1]} : vector<14x128xbf16> to vector<12x128xbf16>
    %34 = tpu.concatenate %31, %32, %33 in 1 : vector<12x128xbf16>, vector<12x128xbf16>, vector<12x128xbf16> -> vector<12x384xbf16>
    %c0_9 = arith.constant 0 : index
    %c0_10 = arith.constant 0 : index
    %35 = vector.load %arg5[%c0_9, %c0_10] : memref<384x128xbf16, #tpu.memory_space<vmem>>, vector<384x128xbf16>
    %cst_11 = arith.constant dense<0.000000e+00> : vector<12x128xf32>
    %36 = tpu.matmul %34, %35, %cst_11 {dimension_numbers = #tpu.dot_dimension_numbers<[1], [0], [0], [1], [0, 0, 1, 1], [], []>} : vector<12x384xbf16>, vector<384x128xbf16>, vector<12x128xf32> -> vector<12x128xf32>
    %c0_12 = arith.constant 0 : index
    %c0_13 = arith.constant 0 : index
    %37 = vector.load %arg6[%c0_12, %c0_13] : memref<1x128xf32, #tpu.memory_space<vmem>>, vector<1x128xf32>
    %38 = vector.broadcast %37 : vector<1x128xf32> to vector<12x128xf32>
    %39 = arith.addf %36, %38 : vector<12x128xf32>
    %40 = vector.extract_strided_slice %5 {offsets = [1, 4], sizes = [12, 4], strides = [1, 1]} : vector<16x8xbf16> to vector<12x4xbf16>
    %c0_14 = arith.constant 0 : index
    %c0_15 = arith.constant 0 : index
    %41 = vector.load %arg7[%c0_14, %c0_15] : memref<4x128xbf16, #tpu.memory_space<vmem>>, vector<4x128xbf16>
    %cst_16 = arith.constant dense<0.000000e+00> : vector<12x128xf32>
    %42 = tpu.matmul %40, %41, %cst_16 {dimension_numbers = #tpu.dot_dimension_numbers<[1], [0], [0], [1], [0, 0, 1, 1], [], []>} : vector<12x4xbf16>, vector<4x128xbf16>, vector<12x128xf32> -> vector<12x128xf32>
    %c0_17 = arith.constant 0 : index
    %c0_18 = arith.constant 0 : index
    %43 = vector.load %arg8[%c0_17, %c0_18] : memref<1x128xf32, #tpu.memory_space<vmem>>, vector<1x128xf32>
    %44 = vector.broadcast %43 : vector<1x128xf32> to vector<12x128xf32>
    %45 = arith.addf %42, %44 : vector<12x128xf32>
    %46 = arith.addf %39, %45 : vector<12x128xf32>
    %cst_19 = arith.constant 0.000000e+00 : f32
    %47 = vector.broadcast %cst_19 : f32 to vector<12x128xf32>
    %48 = arith.maximumf %46, %47 : vector<12x128xf32>
    %c2_i32 = arith.constant 2 : i32
    %49 = arith.subi %0, %c2_i32 : i32
    %50 = tpu.iota {dimensions = array<i32: 0>} : vector<12x1xi32>
    %51 = vector.broadcast %49 : i32 to vector<12x1xi32>
    %52 = arith.addi %51, %50 : vector<12x1xi32>
    %c0_i32_20 = arith.constant 0 : i32
    %53 = vector.broadcast %c0_i32_20 : i32 to vector<12x1xi32>
    %54 = arith.cmpi sge, %52, %53 : vector<12x1xi32>
    %c8_i32_21 = arith.constant 8 : i32
    %55 = vector.broadcast %c8_i32_21 : i32 to vector<12x1xi32>
    %56 = arith.cmpi slt, %52, %55 : vector<12x1xi32>
    %57 = arith.andi %54, %56 : vector<12x1xi1>
    %cst_22 = arith.constant 0.000000e+00 : f32
    %58 = vector.shape_cast %57 : vector<12x1xi1> to vector<12x1xi1>
    %59 = vector.broadcast %58 : vector<12x1xi1> to vector<12x128xi1>
    %60 = vector.broadcast %cst_22 : f32 to vector<12x128xf32>
    %61 = arith.select %59, %48, %60 : vector<12x128xi1>, vector<12x128xf32>
    %62 = arith.truncf %61 : vector<12x128xf32> to vector<12x128xbf16>
    %63 = vector.extract_strided_slice %62 {offsets = [0, 0], sizes = [10, 128], strides = [1, 1]} : vector<12x128xbf16> to vector<10x128xbf16>
    %64 = vector.extract_strided_slice %62 {offsets = [1, 0], sizes = [10, 128], strides = [1, 1]} : vector<12x128xbf16> to vector<10x128xbf16>
    %65 = vector.extract_strided_slice %62 {offsets = [2, 0], sizes = [10, 128], strides = [1, 1]} : vector<12x128xbf16> to vector<10x128xbf16>
    %66 = tpu.concatenate %63, %64, %65 in 1 : vector<10x128xbf16>, vector<10x128xbf16>, vector<10x128xbf16> -> vector<10x384xbf16>
    %c0_23 = arith.constant 0 : index
    %c0_24 = arith.constant 0 : index
    %67 = vector.load %arg9[%c0_23, %c0_24] : memref<384x128xbf16, #tpu.memory_space<vmem>>, vector<384x128xbf16>
    %cst_25 = arith.constant dense<0.000000e+00> : vector<10x128xf32>
    %68 = tpu.matmul %66, %67, %cst_25 {dimension_numbers = #tpu.dot_dimension_numbers<[1], [0], [0], [1], [0, 0, 1, 1], [], []>} : vector<10x384xbf16>, vector<384x128xbf16>, vector<10x128xf32> -> vector<10x128xf32>
    %c0_26 = arith.constant 0 : index
    %c0_27 = arith.constant 0 : index
    %69 = vector.load %arg10[%c0_26, %c0_27] : memref<1x128xf32, #tpu.memory_space<vmem>>, vector<1x128xf32>
    %70 = vector.broadcast %69 : vector<1x128xf32> to vector<10x128xf32>
    %71 = arith.addf %68, %70 : vector<10x128xf32>
    %c1_i32 = arith.constant 1 : i32
    %72 = arith.subi %0, %c1_i32 : i32
    %73 = tpu.iota {dimensions = array<i32: 0>} : vector<10x1xi32>
    %74 = vector.broadcast %72 : i32 to vector<10x1xi32>
    %75 = arith.addi %74, %73 : vector<10x1xi32>
    %c0_i32_28 = arith.constant 0 : i32
    %76 = vector.broadcast %c0_i32_28 : i32 to vector<10x1xi32>
    %77 = arith.cmpi sge, %75, %76 : vector<10x1xi32>
    %c8_i32_29 = arith.constant 8 : i32
    %78 = vector.broadcast %c8_i32_29 : i32 to vector<10x1xi32>
    %79 = arith.cmpi slt, %75, %78 : vector<10x1xi32>
    %80 = arith.andi %77, %79 : vector<10x1xi1>
    %cst_30 = arith.constant 0.000000e+00 : f32
    %81 = vector.shape_cast %80 : vector<10x1xi1> to vector<10x1xi1>
    %82 = vector.broadcast %81 : vector<10x1xi1> to vector<10x128xi1>
    %83 = vector.broadcast %cst_30 : f32 to vector<10x128xf32>
    %84 = arith.select %82, %71, %83 : vector<10x128xi1>, vector<10x128xf32>
    %85 = arith.truncf %84 : vector<10x128xf32> to vector<10x128xbf16>
    %86 = vector.extract_strided_slice %85 {offsets = [0, 0], sizes = [8, 128], strides = [1, 1]} : vector<10x128xbf16> to vector<8x128xbf16>
    %87 = vector.extract_strided_slice %85 {offsets = [1, 0], sizes = [8, 128], strides = [1, 1]} : vector<10x128xbf16> to vector<8x128xbf16>
    %88 = vector.extract_strided_slice %85 {offsets = [2, 0], sizes = [8, 128], strides = [1, 1]} : vector<10x128xbf16> to vector<8x128xbf16>
    %89 = tpu.concatenate %86, %87, %88 in 1 : vector<8x128xbf16>, vector<8x128xbf16>, vector<8x128xbf16> -> vector<8x384xbf16>
    %c0_31 = arith.constant 0 : index
    %c0_32 = arith.constant 0 : index
    %90 = vector.load %arg11[%c0_31, %c0_32] : memref<384x128xbf16, #tpu.memory_space<vmem>>, vector<384x128xbf16>
    %cst_33 = arith.constant dense<0.000000e+00> : vector<8x128xf32>
    %91 = tpu.matmul %89, %90, %cst_33 {dimension_numbers = #tpu.dot_dimension_numbers<[1], [0], [0], [1], [0, 0, 1, 1], [], []>} : vector<8x384xbf16>, vector<384x128xbf16>, vector<8x128xf32> -> vector<8x128xf32>
    %c0_34 = arith.constant 0 : index
    %c0_35 = arith.constant 0 : index
    %92 = vector.load %arg12[%c0_34, %c0_35] : memref<1x128xf32, #tpu.memory_space<vmem>>, vector<1x128xf32>
    %93 = vector.broadcast %92 : vector<1x128xf32> to vector<8x128xf32>
    %94 = arith.addf %91, %93 : vector<8x128xf32>
    %95 = vector.extract_strided_slice %61 {offsets = [2, 0], sizes = [8, 128], strides = [1, 1]} : vector<12x128xf32> to vector<8x128xf32>
    %96 = arith.addf %94, %95 : vector<8x128xf32>
    %cst_36 = arith.constant 0.000000e+00 : f32
    %97 = vector.broadcast %cst_36 : f32 to vector<8x128xf32>
    %98 = arith.maximumf %96, %97 : vector<8x128xf32>
    %c0_37 = arith.constant 0 : index
    %c0_38 = arith.constant 0 : index
    %c0_39 = arith.constant 0 : index
    %99 = vector.load %arg13[%c0_37, %c0_38, %c0_39] : memref<1x8x128xf32, #tpu.memory_space<vmem>>, vector<1x8x128xf32>
    %100 = vector.shape_cast %99 : vector<1x8x128xf32> to vector<8x128xf32>
    %101 = vector.shape_cast %98 : vector<8x128xf32> to vector<1x8x128xf32>
    tpu.vector_store %arg13[%c0_37, %c0_38, %c0_39], %101 {strides = array<i32>} : memref<1x8x128xf32, #tpu.memory_space<vmem>>, vector<1x8x128xf32>,
    return
  }
  func.func @transform_0(%arg0: i32, %arg1: i32) -> (i32, i32, i32) {
    %c0_i32 = arith.constant 0 : i32
    %c0_i32_0 = arith.constant 0 : i32
    %c0_i32_1 = arith.constant 0 : i32
    return %arg0, %c0_i32, %c0_i32_0 : i32, i32, i32
  }
  func.func @transform_1(%arg0: i32, %arg1: i32) -> (i32, i32) {
    %c0_i32 = arith.constant 0 : i32
    %c0_i32_0 = arith.constant 0 : i32
    %c0_i32_1 = arith.constant 0 : i32
    return %c0_i32, %c0_i32_0 : i32, i32
  }
  func.func @transform_2(%arg0: i32, %arg1: i32) -> (i32, i32) {
    %c0_i32 = arith.constant 0 : i32
    %c0_i32_0 = arith.constant 0 : i32
    %c0_i32_1 = arith.constant 0 : i32
    return %c0_i32, %c0_i32_0 : i32, i32
  }
  func.func @transform_3(%arg0: i32, %arg1: i32) -> (i32, i32) {
    %c0_i32 = arith.constant 0 : i32
    %c0_i32_0 = arith.constant 0 : i32
    %c0_i32_1 = arith.constant 0 : i32
    return %c0_i32, %c0_i32_0 : i32, i32
  }
  func.func @transform_4(%arg0: i32, %arg1: i32) -> (i32, i32) {
    %c0_i32 = arith.constant 0 : i32
    %c0_i32_0 = arith.constant 0 : i32
    %c0_i32_1 = arith.constant 0 : i32
    return %c0_i32, %c0_i32_0 : i32, i32
  }
  func.func @transform_5(%arg0: i32, %arg1: i32) -> (i32, i32) {
    %c0_i32 = arith.constant 0 : i32
    %c0_i32_0 = arith.constant 0 : i32
    %c0_i32_1 = arith.constant 0 : i32
    return %c0_i32, %c0_i32_0 : i32, i32
  }
  func.func @transform_6(%arg0: i32, %arg1: i32) -> (i32, i32) {
    %c0_i32 = arith.constant 0 : i32
    %c0_i32_0 = arith.constant 0 : i32
    %c0_i32_1 = arith.constant 0 : i32
    return %c0_i32, %c0_i32_0 : i32, i32
  }
  func.func @transform_7(%arg0: i32, %arg1: i32) -> (i32, i32) {
    %c0_i32 = arith.constant 0 : i32
    %c0_i32_0 = arith.constant 0 : i32
    %c0_i32_1 = arith.constant 0 : i32
    return %c0_i32, %c0_i32_0 : i32, i32
  }
  func.func @transform_8(%arg0: i32, %arg1: i32) -> (i32, i32) {
    %c0_i32 = arith.constant 0 : i32
    %c0_i32_0 = arith.constant 0 : i32
    %c0_i32_1 = arith.constant 0 : i32
    return %c0_i32, %c0_i32_0 : i32, i32
  }
  func.func @transform_9(%arg0: i32, %arg1: i32) -> (i32, i32) {
    %c0_i32 = arith.constant 0 : i32
    %c0_i32_0 = arith.constant 0 : i32
    %c0_i32_1 = arith.constant 0 : i32
    return %c0_i32, %c0_i32_0 : i32, i32
  }
  func.func @transform_10(%arg0: i32, %arg1: i32) -> (i32, i32) {
    %c0_i32 = arith.constant 0 : i32
    %c0_i32_0 = arith.constant 0 : i32
    %c0_i32_1 = arith.constant 0 : i32
    return %c0_i32, %c0_i32_0 : i32, i32
  }
  func.func @transform_11(%arg0: i32, %arg1: i32) -> (i32, i32, i32) {
    %c0_i32 = arith.constant 0 : i32
    %c0_i32_0 = arith.constant 0 : i32
    return %arg0, %arg1, %c0_i32 : i32, i32, i32
  }
}

module attributes {stable_mosaic.version = 11 : i64} {
  func.func @_layer_kernel(%arg0: i32, %arg1: i32, %arg2: memref<1x16x8xbf16, #tpu.memory_space<vmem>>, %arg3: memref<16x128xbf16, #tpu.memory_space<vmem>>, %arg4: memref<1x128xf32, #tpu.memory_space<vmem>>, %arg5: memref<384x128xbf16, #tpu.memory_space<vmem>>, %arg6: memref<1x128xf32, #tpu.memory_space<vmem>>, %arg7: memref<4x128xbf16, #tpu.memory_space<vmem>>, %arg8: memref<1x128xf32, #tpu.memory_space<vmem>>, %arg9: memref<384x128xbf16, #tpu.memory_space<vmem>>, %arg10: memref<1x128xf32, #tpu.memory_space<vmem>>, %arg11: memref<384x128xbf16, #tpu.memory_space<vmem>>, %arg12: memref<1x128xf32, #tpu.memory_space<vmem>>, %arg13: memref<1x8x128xf32, #tpu.memory_space<vmem>>) attributes {dimension_semantics = [#tpu.dimension_semantics<parallel>, #tpu.dimension_semantics<parallel>], iteration_bounds = array<i64: 2, 1>, scalar_prefetch = 0 : i64, scratch_operands = 0 : i64, tpu.core_type = #tpu.core_type<tc>, window_params = [{transform_indices = @transform_0, window_bounds = array<i64: 1, 16, 8>}, {pipeline_mode = #tpu.pipeline_mode<synchronous>, transform_indices = @transform_1, window_bounds = array<i64: 16, 128>}, {pipeline_mode = #tpu.pipeline_mode<synchronous>, transform_indices = @transform_2, window_bounds = array<i64: 1, 128>}, {pipeline_mode = #tpu.pipeline_mode<synchronous>, transform_indices = @transform_3, window_bounds = array<i64: 384, 128>}, {pipeline_mode = #tpu.pipeline_mode<synchronous>, transform_indices = @transform_4, window_bounds = array<i64: 1, 128>}, {pipeline_mode = #tpu.pipeline_mode<synchronous>, transform_indices = @transform_5, window_bounds = array<i64: 4, 128>}, {pipeline_mode = #tpu.pipeline_mode<synchronous>, transform_indices = @transform_6, window_bounds = array<i64: 1, 128>}, {pipeline_mode = #tpu.pipeline_mode<synchronous>, transform_indices = @transform_7, window_bounds = array<i64: 384, 128>}, {pipeline_mode = #tpu.pipeline_mode<synchronous>, transform_indices = @transform_8, window_bounds = array<i64: 1, 128>}, {pipeline_mode = #tpu.pipeline_mode<synchronous>, transform_indices = @transform_9, window_bounds = array<i64: 384, 128>}, {pipeline_mode = #tpu.pipeline_mode<synchronous>, transform_indices = @transform_10, window_bounds = array<i64: 1, 128>}, {transform_indices = @transform_11, window_bounds = array<i64: 1, 8, 128>}]} {
    %c8_i32 = arith.constant 8 : i32
    %0 = arith.muli %arg1, %c8_i32 : i32
    %c8_i32_0 = arith.constant 8 : i32
    %1 = arith.muli %arg1, %c8_i32_0 : i32
    %2 = tpu.assume_multiple %1, 8 : i32
    %c0 = arith.constant 0 : index
    %3 = arith.index_cast %2 : i32 to index
    %c0_1 = arith.constant 0 : index
    %4 = vector.load %arg2[%c0, %3, %c0_1] : memref<1x16x8xbf16, #tpu.memory_space<vmem>>, vector<1x16x8xbf16>
    %5 = vector.shape_cast %4 : vector<1x16x8xbf16> to vector<16x8xbf16>
    %c0_2 = arith.constant 0 : index
    %c0_3 = arith.constant 0 : index
    %6 = vector.load %arg3[%c0_2, %c0_3] : memref<16x128xbf16, #tpu.memory_space<vmem>>, vector<16x128xbf16>
    %7 = vector.extract_strided_slice %5 {offsets = [0, 0], sizes = [14, 8], strides = [1, 1]} : vector<16x8xbf16> to vector<14x8xbf16>
    %8 = vector.extract_strided_slice %6 {offsets = [0, 0], sizes = [8, 128], strides = [1, 1]} : vector<16x128xbf16> to vector<8x128xbf16>
    %cst = arith.constant dense<0.000000e+00> : vector<14x128xf32>
    %9 = tpu.matmul %7, %8, %cst {dimension_numbers = #tpu.dot_dimension_numbers<[1], [0], [0], [1], [0, 0, 1, 1], [], []>} : vector<14x8xbf16>, vector<8x128xbf16>, vector<14x128xf32> -> vector<14x128xf32>
    %10 = vector.extract_strided_slice %5 {offsets = [1, 0], sizes = [14, 8], strides = [1, 1]} : vector<16x8xbf16> to vector<14x8xbf16>
    %11 = vector.extract_strided_slice %6 {offsets = [8, 0], sizes = [8, 128], strides = [1, 1]} : vector<16x128xbf16> to vector<8x128xbf16>
    %cst_4 = arith.constant dense<0.000000e+00> : vector<14x128xf32>
    %12 = tpu.matmul %10, %11, %cst_4 {dimension_numbers = #tpu.dot_dimension_numbers<[1], [0], [0], [1], [0, 0, 1, 1], [], []>} : vector<14x8xbf16>, vector<8x128xbf16>, vector<14x128xf32> -> vector<14x128xf32>
    %13 = arith.addf %9, %12 : vector<14x128xf32>
    %c0_5 = arith.constant 0 : index
    %c0_6 = arith.constant 0 : index
    %14 = vector.load %arg4[%c0_5, %c0_6] : memref<1x128xf32, #tpu.memory_space<vmem>>, vector<1x128xf32>
    %15 = vector.broadcast %14 : vector<1x128xf32> to vector<14x128xf32>
    %16 = arith.addf %13, %15 : vector<14x128xf32>
    %c3_i32 = arith.constant 3 : i32
    %17 = arith.subi %0, %c3_i32 : i32
    %18 = tpu.iota {dimensions = array<i32: 0>} : vector<14x1xi32>
    %19 = vector.broadcast %17 : i32 to vector<14x1xi32>
    %20 = arith.addi %19, %18 : vector<14x1xi32>
    %c0_i32 = arith.constant 0 : i32
    %21 = vector.broadcast %c0_i32 : i32 to vector<14x1xi32>
    %22 = arith.cmpi sge, %20, %21 : vector<14x1xi32>
    %c8_i32_7 = arith.constant 8 : i32
    %23 = vector.broadcast %c8_i32_7 : i32 to vector<14x1xi32>
    %24 = arith.cmpi slt, %20, %23 : vector<14x1xi32>
    %25 = arith.andi %22, %24 : vector<14x1xi1>
    %cst_8 = arith.constant 0.000000e+00 : f32
    %26 = vector.shape_cast %25 : vector<14x1xi1> to vector<14x1xi1>
    %27 = vector.broadcast %26 : vector<14x1xi1> to vector<14x128xi1>
    %28 = vector.broadcast %cst_8 : f32 to vector<14x128xf32>
    %29 = arith.select %27, %16, %28 : vector<14x128xi1>, vector<14x128xf32>
    %30 = arith.truncf %29 : vector<14x128xf32> to vector<14x128xbf16>
    %31 = vector.extract_strided_slice %30 {offsets = [0, 0], sizes = [12, 128], strides = [1, 1]} : vector<14x128xbf16> to vector<12x128xbf16>
    %32 = vector.extract_strided_slice %30 {offsets = [1, 0], sizes = [12, 128], strides = [1, 1]} : vector<14x128xbf16> to vector<12x128xbf16>
    %33 = vector.extract_strided_slice %30 {offsets = [2, 0], sizes = [12, 128], strides = [1, 1]} : vector<14x128xbf16> to vector<12x128xbf16>
    %34 = tpu.concatenate %31, %32, %33 in 1 : vector<12x128xbf16>, vector<12x128xbf16>, vector<12x128xbf16> -> vector<12x384xbf16>
    %c0_9 = arith.constant 0 : index
    %c0_10 = arith.constant 0 : index
    %35 = vector.load %arg5[%c0_9, %c0_10] : memref<384x128xbf16, #tpu.memory_space<vmem>>, vector<384x128xbf16>
    %cst_11 = arith.constant dense<0.000000e+00> : vector<12x128xf32>
    %36 = tpu.matmul %34, %35, %cst_11 {dimension_numbers = #tpu.dot_dimension_numbers<[1], [0], [0], [1], [0, 0, 1, 1], [], []>} : vector<12x384xbf16>, vector<384x128xbf16>, vector<12x128xf32> -> vector<12x128xf32>
    %c0_12 = arith.constant 0 : index
    %c0_13 = arith.constant 0 : index
    %37 = vector.load %arg6[%c0_12, %c0_13] : memref<1x128xf32, #tpu.memory_space<vmem>>, vector<1x128xf32>
    %38 = vector.broadcast %37 : vector<1x128xf32> to vector<12x128xf32>
    %39 = arith.addf %36, %38 : vector<12x128xf32>
    %40 = vector.extract_strided_slice %5 {offsets = [1, 4], sizes = [12, 4], strides = [1, 1]} : vector<16x8xbf16> to vector<12x4xbf16>
    %c0_14 = arith.constant 0 : index
    %c0_15 = arith.constant 0 : index
    %41 = vector.load %arg7[%c0_14, %c0_15] : memref<4x128xbf16, #tpu.memory_space<vmem>>, vector<4x128xbf16>
    %cst_16 = arith.constant dense<0.000000e+00> : vector<12x128xf32>
    %42 = tpu.matmul %40, %41, %cst_16 {dimension_numbers = #tpu.dot_dimension_numbers<[1], [0], [0], [1], [0, 0, 1, 1], [], []>} : vector<12x4xbf16>, vector<4x128xbf16>, vector<12x128xf32> -> vector<12x128xf32>
    %c0_17 = arith.constant 0 : index
    %c0_18 = arith.constant 0 : index
    %43 = vector.load %arg8[%c0_17, %c0_18] : memref<1x128xf32, #tpu.memory_space<vmem>>, vector<1x128xf32>
    %44 = vector.broadcast %43 : vector<1x128xf32> to vector<12x128xf32>
    %45 = arith.addf %42, %44 : vector<12x128xf32>
    %46 = arith.addf %39, %45 : vector<12x128xf32>
    %cst_19 = arith.constant 0.000000e+00 : f32
    %47 = vector.broadcast %cst_19 : f32 to vector<12x128xf32>
    %48 = arith.maximumf %46, %47 : vector<12x128xf32>
    %c2_i32 = arith.constant 2 : i32
    %49 = arith.subi %0, %c2_i32 : i32
    %50 = tpu.iota {dimensions = array<i32: 0>} : vector<12x1xi32>
    %51 = vector.broadcast %49 : i32 to vector<12x1xi32>
    %52 = arith.addi %51, %50 : vector<12x1xi32>
    %c0_i32_20 = arith.constant 0 : i32
    %53 = vector.broadcast %c0_i32_20 : i32 to vector<12x1xi32>
    %54 = arith.cmpi sge, %52, %53 : vector<12x1xi32>
    %c8_i32_21 = arith.constant 8 : i32
    %55 = vector.broadcast %c8_i32_21 : i32 to vector<12x1xi32>
    %56 = arith.cmpi slt, %52, %55 : vector<12x1xi32>
    %57 = arith.andi %54, %56 : vector<12x1xi1>
    %cst_22 = arith.constant 0.000000e+00 : f32
    %58 = vector.shape_cast %57 : vector<12x1xi1> to vector<12x1xi1>
    %59 = vector.broadcast %58 : vector<12x1xi1> to vector<12x128xi1>
    %60 = vector.broadcast %cst_22 : f32 to vector<12x128xf32>
    %61 = arith.select %59, %48, %60 : vector<12x128xi1>, vector<12x128xf32>
    %62 = arith.truncf %61 : vector<12x128xf32> to vector<12x128xbf16>
    %63 = vector.extract_strided_slice %62 {offsets = [0, 0], sizes = [10, 128], strides = [1, 1]} : vector<12x128xbf16> to vector<10x128xbf16>
    %64 = vector.extract_strided_slice %62 {offsets = [1, 0], sizes = [10, 128], strides = [1, 1]} : vector<12x128xbf16> to vector<10x128xbf16>
    %65 = vector.extract_strided_slice %62 {offsets = [2, 0], sizes = [10, 128], strides = [1, 1]} : vector<12x128xbf16> to vector<10x128xbf16>
    %66 = tpu.concatenate %63, %64, %65 in 1 : vector<10x128xbf16>, vector<10x128xbf16>, vector<10x128xbf16> -> vector<10x384xbf16>
    %c0_23 = arith.constant 0 : index
    %c0_24 = arith.constant 0 : index
    %67 = vector.load %arg9[%c0_23, %c0_24] : memref<384x128xbf16, #tpu.memory_space<vmem>>, vector<384x128xbf16>
    %cst_25 = arith.constant dense<0.000000e+00> : vector<10x128xf32>
    %68 = tpu.matmul %66, %67, %cst_25 {dimension_numbers = #tpu.dot_dimension_numbers<[1], [0], [0], [1], [0, 0, 1, 1], [], []>} : vector<10x384xbf16>, vector<384x128xbf16>, vector<10x128xf32> -> vector<10x128xf32>
    %c0_26 = arith.constant 0 : index
    %c0_27 = arith.constant 0 : index
    %69 = vector.load %arg10[%c0_26, %c0_27] : memref<1x128xf32, #tpu.memory_space<vmem>>, vector<1x128xf32>
    %70 = vector.broadcast %69 : vector<1x128xf32> to vector<10x128xf32>
    %71 = arith.addf %68, %70 : vector<10x128xf32>
    %c1_i32 = arith.constant 1 : i32
    %72 = arith.subi %0, %c1_i32 : i32
    %73 = tpu.iota {dimensions = array<i32: 0>} : vector<10x1xi32>
    %74 = vector.broadcast %72 : i32 to vector<10x1xi32>
    %75 = arith.addi %74, %73 : vector<10x1xi32>
    %c0_i32_28 = arith.constant 0 : i32
    %76 = vector.broadcast %c0_i32_28 : i32 to vector<10x1xi32>
    %77 = arith.cmpi sge, %75, %76 : vector<10x1xi32>
    %c8_i32_29 = arith.constant 8 : i32
    %78 = vector.broadcast %c8_i32_29 : i32 to vector<10x1xi32>
    %79 = arith.cmpi slt, %75, %78 : vector<10x1xi32>
    %80 = arith.andi %77, %79 : vector<10x1xi1>
    %cst_30 = arith.constant 0.000000e+00 : f32
    %81 = vector.shape_cast %80 : vector<10x1xi1> to vector<10x1xi1>
    %82 = vector.broadcast %81 : vector<10x1xi1> to vector<10x128xi1>
    %83 = vector.broadcast %cst_30 : f32 to vector<10x128xf32>
    %84 = arith.select %82, %71, %83 : vector<10x128xi1>, vector<10x128xf32>
    %85 = arith.truncf %84 : vector<10x128xf32> to vector<10x128xbf16>
    %86 = vector.extract_strided_slice %85 {offsets = [0, 0], sizes = [8, 128], strides = [1, 1]} : vector<10x128xbf16> to vector<8x128xbf16>
    %87 = vector.extract_strided_slice %85 {offsets = [1, 0], sizes = [8, 128], strides = [1, 1]} : vector<10x128xbf16> to vector<8x128xbf16>
    %88 = vector.extract_strided_slice %85 {offsets = [2, 0], sizes = [8, 128], strides = [1, 1]} : vector<10x128xbf16> to vector<8x128xbf16>
    %89 = tpu.concatenate %86, %87, %88 in 1 : vector<8x128xbf16>, vector<8x128xbf16>, vector<8x128xbf16> -> vector<8x384xbf16>
    %c0_31 = arith.constant 0 : index
    %c0_32 = arith.constant 0 : index
    %90 = vector.load %arg11[%c0_31, %c0_32] : memref<384x128xbf16, #tpu.memory_space<vmem>>, vector<384x128xbf16>
    %cst_33 = arith.constant dense<0.000000e+00> : vector<8x128xf32>
    %91 = tpu.matmul %89, %90, %cst_33 {dimension_numbers = #tpu.dot_dimension_numbers<[1], [0], [0], [1], [0, 0, 1, 1], [], []>} : vector<8x384xbf16>, vector<384x128xbf16>, vector<8x128xf32> -> vector<8x128xf32>
    %c0_34 = arith.constant 0 : index
    %c0_35 = arith.constant 0 : index
    %92 = vector.load %arg12[%c0_34, %c0_35] : memref<1x128xf32, #tpu.memory_space<vmem>>, vector<1x128xf32>
    %93 = vector.broadcast %92 : vector<1x128xf32> to vector<8x128xf32>
    %94 = arith.addf %91, %93 : vector<8x128xf32>
    %95 = vector.extract_strided_slice %61 {offsets = [2, 0], sizes = [8, 128], strides = [1, 1]} : vector<12x128xf32> to vector<8x128xf32>
    %96 = arith.addf %94, %95 : vector<8x128xf32>
    %cst_36 = arith.constant 0.000000e+00 : f32
    %97 = vector.broadcast %cst_36 : f32 to vector<8x128xf32>
    %98 = arith.maximumf %96, %97 : vector<8x128xf32>
    %c0_37 = arith.constant 0 : index
    %c0_38 = arith.constant 0 : index
    %c0_39 = arith.constant 0 : index
    %99 = vector.load %arg13[%c0_37, %c0_38, %c0_39] : memref<1x8x128xf32, #tpu.memory_space<vmem>>, vector<1x8x128xf32>
    %100 = vector.shape_cast %99 : vector<1x8x128xf32> to vector<8x128xf32>
    %101 = vector.shape_cast %98 : vector<8x128xf32> to vector<1x8x128xf32>
    tpu.vector_store %arg13[%c0_37, %c0_38, %c0_39], %101 {strides = array<i32>} : memref<1x8x128xf32, #tpu.memory_space<vmem>>, vector<1x8x128xf32>,
    return
  }
  func.func @transform_0(%arg0: i32, %arg1: i32) -> (i32, i32, i32) {
    %c0_i32 = arith.constant 0 : i32
    %c0_i32_0 = arith.constant 0 : i32
    %c0_i32_1 = arith.constant 0 : i32
    return %arg0, %c0_i32, %c0_i32_0 : i32, i32, i32
  }
  func.func @transform_1(%arg0: i32, %arg1: i32) -> (i32, i32) {
    %c0_i32 = arith.constant 0 : i32
    %c0_i32_0 = arith.constant 0 : i32
    %c0_i32_1 = arith.constant 0 : i32
    return %c0_i32, %c0_i32_0 : i32, i32
  }
  func.func @transform_2(%arg0: i32, %arg1: i32) -> (i32, i32) {
    %c0_i32 = arith.constant 0 : i32
    %c0_i32_0 = arith.constant 0 : i32
    %c0_i32_1 = arith.constant 0 : i32
    return %c0_i32, %c0_i32_0 : i32, i32
  }
  func.func @transform_3(%arg0: i32, %arg1: i32) -> (i32, i32) {
    %c0_i32 = arith.constant 0 : i32
    %c0_i32_0 = arith.constant 0 : i32
    %c0_i32_1 = arith.constant 0 : i32
    return %c0_i32, %c0_i32_0 : i32, i32
  }
  func.func @transform_4(%arg0: i32, %arg1: i32) -> (i32, i32) {
    %c0_i32 = arith.constant 0 : i32
    %c0_i32_0 = arith.constant 0 : i32
    %c0_i32_1 = arith.constant 0 : i32
    return %c0_i32, %c0_i32_0 : i32, i32
  }
  func.func @transform_5(%arg0: i32, %arg1: i32) -> (i32, i32) {
    %c0_i32 = arith.constant 0 : i32
    %c0_i32_0 = arith.constant 0 : i32
    %c0_i32_1 = arith.constant 0 : i32
    return %c0_i32, %c0_i32_0 : i32, i32
  }
  func.func @transform_6(%arg0: i32, %arg1: i32) -> (i32, i32) {
    %c0_i32 = arith.constant 0 : i32
    %c0_i32_0 = arith.constant 0 : i32
    %c0_i32_1 = arith.constant 0 : i32
    return %c0_i32, %c0_i32_0 : i32, i32
  }
  func.func @transform_7(%arg0: i32, %arg1: i32) -> (i32, i32) {
    %c0_i32 = arith.constant 0 : i32
    %c0_i32_0 = arith.constant 0 : i32
    %c0_i32_1 = arith.constant 0 : i32
    return %c0_i32, %c0_i32_0 : i32, i32
  }
  func.func @transform_8(%arg0: i32, %arg1: i32) -> (i32, i32) {
    %c0_i32 = arith.constant 0 : i32
    %c0_i32_0 = arith.constant 0 : i32
    %c0_i32_1 = arith.constant 0 : i32
    return %c0_i32, %c0_i32_0 : i32, i32
  }
  func.func @transform_9(%arg0: i32, %arg1: i32) -> (i32, i32) {
    %c0_i32 = arith.constant 0 : i32
    %c0_i32_0 = arith.constant 0 : i32
    %c0_i32_1 = arith.constant 0 : i32
    return %c0_i32, %c0_i32_0 : i32, i32
  }
  func.func @transform_10(%arg0: i32, %arg1: i32) -> (i32, i32) {
    %c0_i32 = arith.constant 0 : i32
    %c0_i32_0 = arith.constant 0 : i32
    %c0_i32_1 = arith.constant 0 : i32
    return %c0_i32, %c0_i32_0 : i32, i32
  }
  func.func @transform_11(%arg0: i32, %arg1: i32) -> (i32, i32, i32) {
    %c0_i32 = arith.constant 0 : i32
    %c0_i32_0 = arith.constant 0 : i32
    return %arg0, %arg1, %c0_i32 : i32, i32, i32
  }
}

</mosaic_0001>

<bundles_post_ra>
// kernel: tpu_custom_call.1
= control target key start
LH: loop header
LB: loop body
LE: loop exit
PB: predicated region body
PF: predicated region fallthrough
CT: control target
= control target key end

     0   :  { %s3412_s0 = inlined_call_operand.hbm [shape: bf16[2,16,8], index: 0, kind: input, shape index: {}]   ;;  %s3413_s1 = inlined_call_operand.hbm [shape: bf16[16,128], index: 1, kind: input, shape index: {}]   ;;  %s3414_s2 = inlined_call_operand.hbm [shape: f32[1,128], index: 2, kind: input, shape index: {}]   ;;  %s3415_s3 = inlined_call_operand.hbm [shape: bf16[384,128], index: 3, kind: input, shape index: {}]   ;;  %s3416_s4 = inlined_call_operand.hbm [shape: f32[1,128], index: 4, kind: input, shape index: {}]   ;;  %s3417_s5 = inlined_call_operand.hbm [shape: bf16[4,128], index: 5, kind: input, shape index: {}]   ;;  %s3418_s6 = inlined_call_operand.hbm [shape: f32[1,128], index: 6, kind: input, shape index: {}]   ;;  %s3419_s7 = inlined_call_operand.hbm [shape: bf16[384,128], index: 7, kind: input, shape index: {}]   ;;  %s3420_s8 = inlined_call_operand.hbm [shape: f32[1,128], index: 8, kind: input, shape index: {}]   ;;  %s3421_s9 = inlined_call_operand.hbm [shape: bf16[384,128], index: 9, kind: input, shape index: {}]   ;;  %s3422_s10 = inlined_call_operand.hbm [shape: f32[1,128], index: 10, kind: input, shape index: {}]   ;;  %s3423_s11 = inlined_call_operand.hbm [shape: f32[2,8,128], index: 11, kind: output, shape index: {}]  }
   0x1   :  { %3437 = sst [smem:[#allocation31_spill]] %s3412_s0 }
   0x2   :  { %3438 = sst [smem:[#allocation32_spill]] %s3413_s1 }
   0x3   :  { %3439 = sst [smem:[#allocation33_spill]] %s3414_s2 }
   0x4   :  { %3440 = sst [smem:[#allocation34_spill]] %s3415_s3 }
   0x5   :  { %3441 = sst [smem:[#allocation35_spill]] %s3423_s11 }
   0x6   :  { %16 = vsyncpa [#allocation3], 0 }
   0x7   :  { %18 = vsyncpa [#allocation3 + $0x1], 0 }
   0x8   :  { %19 = vsyncpa [#allocation6], 0 }
   0x9   :  { %20 = vsyncpa [#allocation9], 0 }
   0xa   :  { %21 = vsyncpa [#allocation12], 0 }
   0xb   :  { %22 = vsyncpa [#allocation15], 0 }
   0xc   :  { %23 = vsyncpa [#allocation18], 0 }
   0xd   :  { %24 = vsyncpa [#allocation4], 0 }
   0xe   :  { %26 = vsyncpa [#allocation4 + $0x1], 0  ;;  %s2912_s17 = smov 0   ;;  %s2914_s18 = smov 0  }
   0xf   :  { %s2916_s19 = smov 0   ;;  %s2918_s20 = smov 0  }
  0x10   :  { %s2920_s21 = smov 0   ;;  %s2922_s22 = smov 0  }
  0x11 LB: > { %3442 = sst [smem:[#allocation28_spill]] %s2825_s20  ;;  %s3424_s23 = sadd.s32 4294967295, %s2833_s22   ;;  %s2833_s22 = sphi %s2922_s22, %s32_s22   ;;  %s2829_s21 = sphi %s2920_s21, %s3477_s21   ;;  %s2825_s20 = sphi %s2918_s20, %s3476_s20   ;;  %s2821_s19 = sphi %s2916_s19, %s3475_s19   ;;  %s2817_s18 = sphi %s2914_s18, %s3474_s18   ;;  %s2813_s17 = sphi %s2912_s17, %s3473_s17  }
  0x12   : > { %p1872_p0 = scmp.ge.s32.totalorder %s2833_s22, 1  ;;  %p2946_p1 = scmp.eq.s32.totalorder %s3424_s23, 0 }
  0x13   : > { %p313_p2 = scmp.lt.s32.totalorder %s2833_s22, 3  ;;  %s2835_s26 = smov [#allocation5]  }
  0x14   : > { %s3443_s24 = scalar_select %p2946_p1, 1, 0 }
  0x15   : > { %p2951_p3 = pnand %p1872_p0, %p313_p2  ;;  %s325_s27 = sshll.u32 %s2835_s26, 4  ;;  %s2955_s27 = int_to_ptr.vmem [resolvable:$true] %s325_s27 }
  0x16   : > { %3444 = sst [smem:[#allocation29_spill]] %s3443_s24  ;;  %s2836_s29 = smov [#allocation8]  }
  0x17   : > { %s3445_s25 = scalar_select %p2951_p3, 1, 0 }
  0x18   : > { %p2224_p4 = pneg %p2951_p3  ;;  %s349_s30 = sshll.u32 %s2836_s29, 4  ;;  %s2966_s30 = int_to_ptr.vmem [resolvable:$true] %s349_s30 }
  0x19   : > { %3446 = sst [smem:[#allocation30_spill]] %s3445_s25  ;;  %s2837_s12 = smov [#allocation11]  }
  0x1a   : > { %p2962_p6 = pnand %p2224_p4, %p2946_p1  ;;  %s2968_s13 = sshll.u32 %s2837_s12, 4  ;;  %s375_s13 = int_to_ptr.vmem [resolvable:$true] %s2968_s13 }
  0x1b   : > { %s3448_s1 = sld [smem:[#allocation32_spill]] }
  0x1c   : > { %p2978_p8 = pneg %p2962_p6 }
  0x21   : > { %s2421_s16 = scalar_lea.hbm %s3448_s1, 128 }
  0x22   : > { %p2422_p7 = scmp.ne.s32.totalorder %s3448_s1, %s2421_s16  ;;  %p2428_p11 = scmp.lt.u32.totalorder %s2421_s16, %s3448_s1 }
  0x24   : > { %p2424_p9 = pnand %p2978_p8, %p2422_p7 }
  0x26   : > { %p2425_p10 = pneg %p2424_p9 }
  0x28   : > { %p2430_p12 = pnand %p2428_p11, %p2425_p10 }
  0x2a   : > { %2433 = shalt.err (!%p2430_p12)
}
  0x2b   : > { %s2434_s23 = scalar_lea.vmem %s2955_s27, 128  ;;  %p2442_p4 = scmp.lt.s32.totalorder %s2955_s27, %s2955_s27 }
  0x2c   : > { %p2435_p13 = scmp.ne.s32.totalorder %s2955_s27, %s2434_s23  ;;  %p2443_p5 = scmp.lt.s32.totalorder %s2434_s23, %s2434_s23 }
  0x2e   : > { %p2437_p0 = pnand %p2435_p13, %p2978_p8  ;;  %p2444_p7 = por %p2443_p5, %p2442_p4 }
  0x30   : > { %p2438_p2 = pneg %p2437_p0 }
  0x32   : > { %p2445_p9 = pnand %p2444_p7, %p2438_p2 }
  0x34   : > { %2448 = shalt.err (!%p2445_p9)
}
  0x35   : > { %s3433_s14 = smov 64   ;;  %s3435_s15 = smov 4  }
  0x36   : > { %2227 = dma.hbm_to_vmem [thread:$0]  (!%p2962_p6), %s3448_s1, 128, %s2955_s27, [#allocation6], %s3433_s14, %s3433_s14, %s3435_s15  }
  0x37   : > { %s3450_s3 = sld [smem:[#allocation34_spill]] }
  0x3d   : > { %s2449_s23 = scalar_lea.hbm %s3450_s3, 3072 }
  0x3e   : > { %p2450_p5 = scmp.ne.s32.totalorder %s3450_s3, %s2449_s23  ;;  %p2456_p12 = scmp.lt.u32.totalorder %s2449_s23, %s3450_s3 }
  0x40   : > { %p2452_p10 = pnand %p2450_p5, %p2978_p8 }
  0x42   : > { %p2453_p11 = pneg %p2452_p10 }
  0x44   : > { %p2458_p13 = pnand %p2456_p12, %p2453_p11 }
  0x46   : > { %2461 = shalt.err (!%p2458_p13)
}
  0x47   : > { %s2462_s27 = scalar_lea.vmem %s2966_s30, 3072  ;;  %p2470_p7 = scmp.lt.s32.totalorder %s2966_s30, %s2966_s30 }
  0x48   : > { %p2463_p0 = scmp.ne.s32.totalorder %s2966_s30, %s2462_s27  ;;  %p2471_p9 = scmp.lt.s32.totalorder %s2462_s27, %s2462_s27 }
  0x4a   : > { %p2465_p2 = pnand %p2463_p0, %p2978_p8  ;;  %p2472_p5 = por %p2471_p9, %p2470_p7 }
  0x4c   : > { %p2466_p4 = pneg %p2465_p2 }
  0x4e   : > { %p2473_p10 = pnand %p2472_p5, %p2466_p4 }
  0x50   : > { %2476 = shalt.err (!%p2473_p10)
}
  0x51   : > { %2233 = dma.hbm_to_vmem [thread:$0]  (!%p2962_p6), %s3450_s3, 3072, %s2966_s30, [#allocation9], %s3433_s14, %s3433_s14, %s3435_s15  }
  0x52   : > { %s2477_s16 = scalar_lea.hbm %s3417_s5, 32 }
  0x53   : > { %p2478_p11 = scmp.ne.s32.totalorder %s3417_s5, %s2477_s16  ;;  %p2484_p0 = scmp.lt.u32.totalorder %s2477_s16, %s3417_s5 }
  0x55   : > { %p2480_p12 = pnand %p2478_p11, %p2978_p8 }
  0x57   : > { %p2481_p13 = pneg %p2480_p12 }
  0x59   : > { %p2486_p2 = pnand %p2484_p0, %p2481_p13 }
  0x5b   : > { %2489 = shalt.err (!%p2486_p2)
}
  0x5c   : > { %s2490_s27 = scalar_lea.vmem %s375_s13, 32  ;;  %p2498_p5 = scmp.lt.s32.totalorder %s375_s13, %s375_s13 }
  0x5d   : > { %p2491_p4 = scmp.ne.s32.totalorder %s375_s13, %s2490_s27  ;;  %p2499_p10 = scmp.lt.s32.totalorder %s2490_s27, %s2490_s27 }
  0x5f   : > { %p2493_p7 = pnand %p2491_p4, %p2978_p8  ;;  %p2500_p3 = por %p2499_p10, %p2498_p5 }
  0x61   : > { %p2494_p9 = pneg %p2493_p7 }
  0x63   : > { %p2501_p1 = pnand %p2500_p3, %p2494_p9 }
  0x65   : > { %2504 = shalt.err (!%p2501_p1)
}
  0x66   : > { %2239 = dma.hbm_to_vmem [thread:$0]  (!%p2962_p6), %s3417_s5, 32, %s375_s13, [#allocation12]  }
  0x67   : > { %s2840_s20 = smov [#allocation14]   ;;  %s2841_s25 = smov [#allocation17]  }
  0x68   : > { %s395_s24 = sshll.u32 %s2840_s20, 4  ;;  %s419_s16 = sshll.u32 %s2841_s25, 4  ;;  %s396_s24 = int_to_ptr.vmem [resolvable:$true] %s395_s24  ;;  %s420_s16 = int_to_ptr.vmem [resolvable:$true] %s419_s16 }
  0x69   : > { %s2505_s12 = scalar_lea.hbm %s3419_s7, 3072 }
  0x6a   : > { %p2506_p1 = scmp.ne.s32.totalorder %s3419_s7, %s2505_s12  ;;  %p2512_p12 = scmp.lt.u32.totalorder %s2505_s12, %s3419_s7 }
  0x6c   : > { %p2508_p3 = pnand %p2506_p1, %p2978_p8 }
  0x6e   : > { %p2509_p11 = pneg %p2508_p3 }
  0x70   : > { %p2514_p13 = pnand %p2512_p12, %p2509_p11 }
  0x72   : > { %2517 = shalt.err (!%p2514_p13)
}
  0x73   : > { %s2518_s13 = scalar_lea.vmem %s396_s24, 3072  ;;  %p2526_p7 = scmp.lt.s32.totalorder %s396_s24, %s396_s24 }
  0x74   : > { %p2519_p0 = scmp.ne.s32.totalorder %s396_s24, %s2518_s13  ;;  %p2527_p9 = scmp.lt.s32.totalorder %s2518_s13, %s2518_s13 }
  0x76   : > { %p2521_p2 = pnand %p2519_p0, %p2978_p8  ;;  %p2528_p5 = por %p2527_p9, %p2526_p7 }
  0x78   : > { %p2522_p4 = pneg %p2521_p2 }
  0x7a   : > { %p2529_p10 = pnand %p2528_p5, %p2522_p4 }
  0x7c   : > { %2532 = shalt.err (!%p2529_p10)
}
  0x7d   : > { %s3451_s0 = smov 64   ;;  %s2533_s29 = scalar_lea.hbm %s3421_s9, 3072 }
  0x7e   : > { %2245 = dma.hbm_to_vmem [thread:$0]  (!%p2962_p6), %s3419_s7, 3072, %s396_s24, [#allocation15], %s3451_s0, %s3451_s0, %s3435_s15  }
  0x7f   : > { %p2534_p1 = scmp.ne.s32.totalorder %s3421_s9, %s2533_s29  ;;  %p2540_p12 = scmp.lt.u32.totalorder %s2533_s29, %s3421_s9 }
  0x81   : > { %p2536_p3 = pnand %p2534_p1, %p2978_p8 }
  0x83   : > { %p2537_p11 = pneg %p2536_p3 }
  0x85   : > { %p2542_p13 = pnand %p2540_p12, %p2537_p11 }
  0x87   : > { %2545 = shalt.err (!%p2542_p13)
}
  0x88   : > { %s2546_s13 = scalar_lea.vmem %s420_s16, 3072  ;;  %p2554_p7 = scmp.lt.s32.totalorder %s420_s16, %s420_s16 }
  0x89   : > { %p2547_p0 = scmp.ne.s32.totalorder %s420_s16, %s2546_s13  ;;  %p2555_p9 = scmp.lt.s32.totalorder %s2546_s13, %s2546_s13 }
  0x8b   : > { %p2549_p2 = pnand %p2547_p0, %p2978_p8  ;;  %p2556_p5 = por %p2555_p9, %p2554_p7 }
  0x8d   : > { %p2550_p4 = pneg %p2549_p2 }
  0x8f   : > { %p2557_p10 = pnand %p2556_p5, %p2550_p4 }
  0x91   : > { %2560 = shalt.err (!%p2557_p10)
}
  0x92   : > { %2251 = dma.hbm_to_vmem [thread:$0]  (!%p2962_p6), %s3421_s9, 3072, %s420_s16, [#allocation18], %s3451_s0, %s3451_s0, %s3435_s15  }
  0x93   : > { %s2842_s20 = smov [#allocation7]   ;;  %s2843_s26 = smov [#allocation10]  }
  0x94   : > { %s339_s25 = sshll.u32 %s2842_s20, 4  ;;  %s363_s29 = sshll.u32 %s2843_s26, 4  ;;  %s340_s25 = int_to_ptr.vmem [resolvable:$true] %s339_s25  ;;  %s364_s29 = int_to_ptr.vmem [resolvable:$true] %s363_s29 }
  0x95   : > { %s3452_s2 = sld [smem:[#allocation33_spill]] }
  0x9b   : > { %s2561_s27 = scalar_lea.hbm %s3452_s2, 16 }
  0x9c   : > { %p2562_p1 = scmp.ne.s32.totalorder %s3452_s2, %s2561_s27  ;;  %p2568_p12 = scmp.lt.u32.totalorder %s2561_s27, %s3452_s2 }
  0x9e   : > { %p2564_p3 = pnand %p2562_p1, %p2978_p8 }
  0xa0   : > { %p2565_p11 = pneg %p2564_p3 }
  0xa2   : > { %p2570_p13 = pnand %p2568_p12, %p2565_p11 }
  0xa4   : > { %2573 = shalt.err (!%p2570_p13)
}
  0xa5   : > { %s2574_s16 = scalar_lea.vmem %s340_s25, 16  ;;  %s2581_s14 = scalar_lea.vmem %s340_s25, 32 }
  0xa6   : > { %p2575_p0 = scmp.ne.s32.totalorder %s340_s25, %s2574_s16  ;;  %p2582_p7 = scmp.lt.s32.totalorder %s340_s25, %s340_s25 }
  0xa7   : > { %p2583_p9 = scmp.lt.s32.totalorder %s2581_s14, %s2574_s16 }
  0xa8   : > { %p2577_p2 = pnand %p2575_p0, %p2978_p8 }
  0xa9   : > { %p2584_p5 = por %p2583_p9, %p2582_p7 }
  0xaa   : > { %p2578_p4 = pneg %p2577_p2 }
  0xac   : > { %p2585_p10 = pnand %p2584_p5, %p2578_p4 }
  0xae   : > { %2588 = shalt.err (!%p2585_p10)
}
  0xaf   : > { %2230 = dma.hbm_to_vmem [thread:$0]  (!%p2962_p6), %s3452_s2, 16, %s340_s25, [#allocation6]  }
  0xb0   : > { %s2589_s23 = scalar_lea.hbm %s3416_s4, 16 }
  0xb1   : > { %p2590_p1 = scmp.ne.s32.totalorder %s3416_s4, %s2589_s23  ;;  %p2596_p12 = scmp.lt.u32.totalorder %s2589_s23, %s3416_s4 }
  0xb3   : > { %p2592_p3 = pnand %p2590_p1, %p2978_p8 }
  0xb5   : > { %p2593_p11 = pneg %p2592_p3 }
  0xb7   : > { %p2598_p13 = pnand %p2596_p12, %p2593_p11 }
  0xb9   : > { %2601 = shalt.err (!%p2598_p13)
}
  0xba   : > { %s2602_s16 = scalar_lea.vmem %s364_s29, 16  ;;  %s2609_s25 = scalar_lea.vmem %s364_s29, 32 }
  0xbb   : > { %p2603_p0 = scmp.ne.s32.totalorder %s364_s29, %s2602_s16  ;;  %p2610_p7 = scmp.lt.s32.totalorder %s364_s29, %s364_s29 }
  0xbc   : > { %p2611_p9 = scmp.lt.s32.totalorder %s2609_s25, %s2602_s16 }
  0xbd   : > { %p2605_p2 = pnand %p2603_p0, %p2978_p8 }
  0xbe   : > { %p2612_p5 = por %p2611_p9, %p2610_p7 }
  0xbf   : > { %p2606_p4 = pneg %p2605_p2 }
  0xc1   : > { %p2613_p10 = pnand %p2612_p5, %p2606_p4 }
  0xc3   : > { %2616 = shalt.err (!%p2613_p10)
}
  0xc4   : > { %2236 = dma.hbm_to_vmem [thread:$0]  (!%p2962_p6), %s3416_s4, 16, %s364_s29, [#allocation9]  }
  0xc5   : > { %s2844_s26 = smov [#allocation13]   ;;  %s2845_s12 = smov [#allocation16]  }
  0xc6   : > { %s385_s1 = sshll.u32 %s2844_s26, 4  ;;  %s409_s23 = sshll.u32 %s2845_s12, 4  ;;  %s386_s1 = int_to_ptr.vmem [resolvable:$true] %s385_s1  ;;  %s410_s23 = int_to_ptr.vmem [resolvable:$true] %s409_s23 }
  0xc7   : > { %s2617_s13 = scalar_lea.hbm %s3418_s6, 16 }
  0xc8   : > { %p2618_p1 = scmp.ne.s32.totalorder %s3418_s6, %s2617_s13  ;;  %p2624_p12 = scmp.lt.u32.totalorder %s2617_s13, %s3418_s6 }
  0xca   : > { %p2620_p3 = pnand %p2618_p1, %p2978_p8 }
  0xcc   : > { %p2621_p11 = pneg %p2620_p3 }
  0xce   : > { %p2626_p13 = pnand %p2624_p12, %p2621_p11 }
  0xd0   : > { %2629 = shalt.err (!%p2626_p13)
}
  0xd1   : > { %s2630_s29 = scalar_lea.vmem %s386_s1, 16  ;;  %s2637_s20 = scalar_lea.vmem %s386_s1, 32 }
  0xd2   : > { %p2631_p0 = scmp.ne.s32.totalorder %s386_s1, %s2630_s29  ;;  %p2638_p7 = scmp.lt.s32.totalorder %s386_s1, %s386_s1 }
  0xd3   : > { %p2639_p9 = scmp.lt.s32.totalorder %s2637_s20, %s2630_s29 }
  0xd4   : > { %p2633_p2 = pnand %p2631_p0, %p2978_p8 }
  0xd5   : > { %p2640_p5 = por %p2639_p9, %p2638_p7 }
  0xd6   : > { %p2634_p4 = pneg %p2633_p2 }
  0xd8   : > { %p2641_p10 = pnand %p2640_p5, %p2634_p4 }
  0xda   : > { %2644 = shalt.err (!%p2641_p10)
}
  0xdb   : > { %2242 = dma.hbm_to_vmem [thread:$0]  (!%p2962_p6), %s3418_s6, 16, %s386_s1, [#allocation12]  }
  0xdc   : > { %s2645_s13 = scalar_lea.hbm %s3420_s8, 16 }
  0xdd   : > { %p2646_p1 = scmp.ne.s32.totalorder %s3420_s8, %s2645_s13  ;;  %p2652_p12 = scmp.lt.u32.totalorder %s2645_s13, %s3420_s8 }
  0xdf   : > { %p2648_p3 = pnand %p2646_p1, %p2978_p8 }
  0xe1   : > { %p2649_p11 = pneg %p2648_p3 }
  0xe3   : > { %p2654_p13 = pnand %p2652_p12, %p2649_p11 }
  0xe5   : > { %2657 = shalt.err (!%p2654_p13)
}
  0xe6   : > { %s2658_s29 = scalar_lea.vmem %s410_s23, 16  ;;  %s2665_s1 = scalar_lea.vmem %s410_s23, 32 }
  0xe7   : > { %p2659_p0 = scmp.ne.s32.totalorder %s410_s23, %s2658_s29  ;;  %p2666_p7 = scmp.lt.s32.totalorder %s410_s23, %s410_s23 }
  0xe8   : > { %p2667_p9 = scmp.lt.s32.totalorder %s2665_s1, %s2658_s29 }
  0xe9   : > { %p2661_p2 = pnand %p2659_p0, %p2978_p8 }
  0xea   : > { %p2668_p5 = por %p2667_p9, %p2666_p7 }
  0xeb   : > { %p2662_p4 = pneg %p2661_p2 }
  0xed   : > { %p2669_p10 = pnand %p2668_p5, %p2662_p4 }
  0xef   : > { %2672 = shalt.err (!%p2669_p10)
}
  0xf0   : > { %2248 = dma.hbm_to_vmem [thread:$0]  (!%p2962_p6), %s3420_s8, 16, %s410_s23, [#allocation15]  }
  0xf1   : > { %s2846_s12 = smov [#allocation19]   ;;  %s2673_s24 = scalar_lea.hbm %s3422_s10, 16 }
  0xf2   : > { %s433_s27 = sshll.u32 %s2846_s12, 4  ;;  %p2674_p1 = scmp.ne.s32.totalorder %s3422_s10, %s2673_s24  ;;  %s434_s27 = int_to_ptr.vmem [resolvable:$true] %s433_s27 }
  0xf3   : > { %p2680_p12 = scmp.lt.u32.totalorder %s2673_s24, %s3422_s10 }
  0xf4   : > { %p2676_p3 = pnand %p2674_p1, %p2978_p8 }
  0xf6   : > { %p2677_p11 = pneg %p2676_p3 }
  0xf8   : > { %p2682_p13 = pnand %p2680_p12, %p2677_p11 }
  0xfa   : > { %2685 = shalt.err (!%p2682_p13)
}
  0xfb   : > { %s2686_s23 = scalar_lea.vmem %s434_s27, 16  ;;  %s2693_s1 = scalar_lea.vmem %s434_s27, 32 }
  0xfc   : > { %p2687_p0 = scmp.ne.s32.totalorder %s434_s27, %s2686_s23  ;;  %p2694_p7 = scmp.lt.s32.totalorder %s434_s27, %s434_s27 }
  0xfd   : > { %p2695_p9 = scmp.lt.s32.totalorder %s2693_s1, %s2686_s23 }
  0xfe   : > { %p2689_p2 = pnand %p2687_p0, %p2978_p8 }
  0xff   : > { %p2696_p5 = por %p2695_p9, %p2694_p7 }
 0x100   : > { %p2690_p4 = pneg %p2689_p2 }
 0x102   : > { %p2697_p10 = pnand %p2696_p5, %p2690_p4 }
 0x104   : > { %2700 = shalt.err (!%p2697_p10)
}
 0x105   : > { %s3453_s11 = sld [smem:[#allocation29_spill]]  ;;  %s1871_s12 = sadd.s32 4294967294, %s2833_s22  }
 0x106   : > { %2254 = dma.hbm_to_vmem [thread:$0]  (!%p2962_p6), %s3422_s10, 16, %s434_s27, [#allocation18]  }
 0x107   : > { %s44_s30 = sadd.s32 1, %s2829_s21  ;;  %s51_s28 = sadd.s32 1, %s2821_s19 }
 0x108   : > { %p46_p8 = scmp.ge.s32.totalorder %s44_s30, 2  ;;  %p58_p1 = scmp.ne.s32.totalorder %s2821_s19, %s2817_s18 }
 0x109   : > { %p59_p3 = scmp.eq.s32.totalorder %s2833_s22, 0  ;;  %p64_p12 = scmp.ne.s32.totalorder %s2817_s18, %s2813_s17 }
 0x10a   : > { %s3479_s30 = smov (%p46_p8, %s44_s30), 0  ;;  %s3455_s24 = sadd.s32 4294967295, %s2833_s22  }
 0x10b   : > { %p3187_p11 = por %p59_p3, %p58_p1  ;;  %s48_s27 = ssub.s32 %s2829_s21, %s3479_s30 }
 0x10c   : > { %p300_p6 = scmp.eq.s32.totalorder %s3455_s24, 1  ;;  %p49_p13 = scmp.eq.s32.totalorder %s48_s27, 0 }
 0x10d   : > { %p3456_p0 = scmp.ne.s32.totalorder %s3453_s11, 0  ;;  %p306_p7 = scmp.eq.s32.totalorder %s1871_s12, 1 }
 0x10e   : > { %p3203_p4 = por %p300_p6, %p58_p1  ;;  %p2273_p5 = scmp.lt.s32.totalorder %s2833_s22, 2 }
 0x10f   : > { %p3199_p2 = por %p3456_p0, %p64_p12  ;;  %p3210_p9 = por %p306_p7, %p64_p12 }
 0x110   : > { %s3458_s25 = scalar_select %p3203_p4, 1, 0 }
 0x111   : > { %s3208_s14 = scalar_select %p49_p13, %s2821_s19, %s51_s28  }
 0x112   : > { %s3459_s29 = scalar_select %p3210_p9, 1, 0 }
 0x113   : > { %s444_s23 = sand.u32 1, %s2821_s19   ;;  %s1994_s1 = sshll.u32 %s2829_s21, 7 }
 0x114   : > { %s1884_s20 = sshll.u32 %s444_s23, 3  ;;  %s3460_s27 = sld [smem:[#allocation31_spill]] }
 0x115   : > { %s448_s12 = scalar_lea.vmem [#allocation2], %s1884_s20  ;;  %p3224_p10 = pnand %p2273_p5, %p3187_p11 }
 0x116   : > { %s455_s28 = sshll.u32 %s448_s12, 4  ;;  %s3230_s2 = scalar_lea.sflag [#allocation3], %s444_s23  ;;  %s3228_s28 = int_to_ptr.vmem [resolvable:$true] %s455_s28 }
 0x117   : > { %p2703_p1 = pneg %p3224_p10 }
 0x11a   : > { %s3220_s24 = scalar_lea.hbm %s3460_s27, %s1994_s1  ;;  %s2706_s20 = scalar_lea.hbm %s3460_s27, 256 }
 0x11b   : > { %s2701_s26 = scalar_lea.hbm %s3220_s24, 128  ;;  %p2707_p11 = scmp.lt.u32.totalorder %s3220_s24, %s3460_s27 }
 0x11c   : > { %p2702_p8 = scmp.ne.s32.totalorder %s3220_s24, %s2701_s26  ;;  %p2708_p6 = scmp.lt.u32.totalorder %s2706_s20, %s2701_s26 }
 0x11d   : > { %p2710_p0 = scmp.lt.u32.totalorder %s2701_s26, %s3220_s24 }
 0x11e   : > { %p2704_p3 = pnand %p2703_p1, %p2702_p8  ;;  %p2709_p13 = por %p2708_p6, %p2707_p11 }
 0x120   : > { %p2705_p12 = pneg %p2704_p3  ;;  %p2711_p7 = por %p2710_p0, %p2709_p13 }
 0x122   : > { %p2712_p5 = pnand %p2711_p7, %p2705_p12 }
 0x124   : > { %2715 = shalt.err (!%p2712_p5)
}
 0x125   : > { %s2716_s23 = scalar_lea.vmem %s3228_s28, 128  ;;  %s2847_s1 = smov [#allocation2]  }
 0x126   : > { %p2717_p8 = scmp.ne.s32.totalorder %s3228_s28, %s2716_s23  ;;  %s2721_s13 = sshll.u32 %s2847_s1, 4  ;;  %s2722_s13 = int_to_ptr.vmem [resolvable:$false] %s2721_s13 }
 0x127   : > { %s2723_s11 = scalar_lea.vmem %s2722_s13, 256  ;;  %p2724_p4 = scmp.lt.s32.totalorder %s3228_s28, %s2722_s13 }
 0x128   : > { %p2719_p3 = pnand %p2717_p8, %p2703_p1  ;;  %p2725_p11 = scmp.lt.s32.totalorder %s2723_s11, %s2716_s23 }
 0x12a   : > { %p2720_p9 = pneg %p2719_p3  ;;  %p2726_p6 = por %p2725_p11, %p2724_p4 }
 0x12c   : > { %p2727_p13 = pnand %p2726_p6, %p2720_p9 }
 0x12e   : > { %2730 = shalt.err (!%p2727_p13)
}
 0x12f   : > { %s3462_s26 = smov 4   ;;  %s3463_s20 = sld [smem:[#allocation30_spill]] }
 0x130   : > { %2258 = dma.hbm_to_vmem [thread:$0]  (!%p3224_p10), %s3220_s24, 128, %s3228_s28, %s3230_s2, %s3451_s0, %s3451_s0, %s3462_s26  }
 0x135   : > { %p3464_p1 = scmp.ne.s32.totalorder %s3463_s20, 0 }
 0x136   : > { %s3264_s12 = sand.u32 (!%p3464_p1), 1, %s2817_s18  }
 0x137   : > { %467 = sbr.rel (%p3464_p1) target bundleno = 1275 (0x4fb), region = 64  ;;  %s1888_s23 = sshll.u32 (!%p3464_p1), %s3264_s12, 3 }
 0x138   : > { %s470_s1 = scalar_lea.sflag (!%p3464_p1), [#allocation3], %s3264_s12  ;;  %s473_s15 = scalar_lea.vmem (!%p3464_p1), [#allocation2], %s1888_s23 }
 0x13e   : > { %2784 = dma.done.wait (%p3199_p2), %s470_s1, 128  }
 0x13f   : > { %2786 = vsyncadd (%p3199_p2), %s470_s1, 4294967168  ;;  %s3465_s2 = sld [smem:[#allocation29_spill]] }
 0x145   : > { %p3466_p4 = scmp.ne.s32.totalorder %s3465_s2, 0 }
 0x147   : > { %2788 = dma.done.wait (%p3466_p4), [#allocation6], 144  }
 0x148   : > { %2790 = vsyncadd (%p3466_p4), [#allocation6], 4294967152 }
 0x149   : > { %2792 = dma.done.wait (%p3466_p4), [#allocation9], 3088  }
 0x14a   : > { %2794 = vsyncadd (%p3466_p4), [#allocation9], 4294964208 }
 0x14b   : > { %2796 = dma.done.wait (%p3466_p4), [#allocation12], 48  }
 0x14c   : > { %2798 = vsyncadd (%p3466_p4), [#allocation12], 4294967248 }
 0x14d   : > { %2800 = dma.done.wait (%p3466_p4), [#allocation15], 3088  }
 0x14e   : > { %2802 = vsyncadd (%p3466_p4), [#allocation15], 4294964208 }
 0x14f   : > { %2804 = dma.done.wait (%p3466_p4), [#allocation18], 3088  }
 0x150   : > { %2806 = vsyncadd (%p3466_p4), [#allocation18], 4294964208  ;;  %v2848_v0 = vmov 0.0   ;;  %vm2849_vm0 = vmmov 0   ;;  %vm578_vm1 = vcmask 1043456   ;;  %vm574_vm2 = vcmask 64512  }
 0x151   : > { %2100 = vmatprep.subr.bf16.mxu1 %v2848_v0  ;;  %2094 = vmatprep.subr.bf16.mxu0 %v2848_v0  ;;  %v560_v1 = vld [vmem:[#allocation5] sm:$0xf]  ;;  %v561_v2 = vld [vmem:[#allocation5 + $0x4] sm:$0xf]  ;;  %v2348_v5 = vld [vmem:[%s473_s15] sm:$0xff]   ;;  %s2850_s0 = smov 124   ;;  %v679_v35 = vlaneseq }
 0x152   : > { %2102 = vmatprep.mubr.msk.bf16.mxu1 %vm2849_vm0, %v2848_v0  ;;  %2096 = vmatprep.mubr.msk.bf16.mxu0 %vm2849_vm0, %v2848_v0  ;;  %v626_v3 = vsel %vm578_vm1, %v560_v1, 0  ;;  %v580_v4 = vsel %vm578_vm1, %v561_v2, 0  ;;  %v2349_v6 = vld [vmem:[#allocation8 + $0x80] sm:$0xff]   ;;  %v568_v7 = vshrl.u32 %v2348_v5, 16  ;;  %v570_v8 = vshll.u32 %v2348_v5, 16  ;;  %v2350_v11 = vld [vmem:[#allocation8 + $0x88] sm:$0xff]  }
 0x153   : > { %2101 = vmatpush3.bf16.msra.mxu1 %v626_v3  ;;  %2095 = vmatpush3.bf16.msra.mxu0 %v580_v4  ;;  %v2351_v9 = vld [vmem:[#allocation8 + $0x40] sm:$0xff]   ;;  %v2354_v14 = vld [vmem:[#allocation8 + $0x48] sm:$0xff]   ;;  %v2353_v15 = vld [vmem:[#allocation8 + $0x90] sm:$0xff]   ;;  %v3313_v36 = vshrl.u32 %v679_v35, 7  ;;  %vm1004_vm5 = vcmask 1041408   ;;  %vm1000_vm7 = vcmask 31744  }
 0x154   : > { %2106 = vmatprep.subr.bf16.mxu1 %v2848_v0  ;;  %v572_v10 = vrot.slane %v570_v8, 1  ;;  %1999 = vmatprep.subr.bf16.mxu0 %v2351_v9  ;;  %v2352_v12 = vld [vmem:[#allocation8] sm:$0xff]   ;;  %v2355_v16 = vld [vmem:[#allocation8 + $0x8] sm:$0xff]   ;;  %v2357_v17 = vld [vmem:[#allocation8 + $0x50] sm:$0xff]   ;;  %vm1671_vm10 = vcmask 1045504   ;;  %s3467_s16 = sld [smem:[#allocation28_spill]] }
 0x155   : > { %v2356_v18 = vld [vmem:[#allocation8 + $0x98] sm:$0xff]   ;;  %v2358_v19 = vld [vmem:[#allocation8 + $0x10] sm:$0xff]   ;;  %v2359_v20 = vld [vmem:[#allocation8 + $0xa0] sm:$0xff]   ;;  %v3316_v38 = vadd.s32 8, %v3313_v36  ;;  %v683_v44 = vadd.s32 4294967293, %v3313_v36  ;;  %v1055_v35 = vadd.s32 4294967294, %v3313_v36 }
 0x156   : > { %2103 = vmatmul.mubr.msk.bf16.vlgmr.msra.gmra.mrb[0].mxu1 %vm574_vm2, %v2348_v5  ;;  %v573_v13 = vor.u32 %v572_v10, %v568_v7  ;;  %v2360_v21 = vld [vmem:[#allocation8 + $0x58] sm:$0xff]   ;;  %v2362_v23 = vld [vmem:[#allocation8 + $0xa8] sm:$0xff]   ;;  %v2363_v24 = vld [vmem:[#allocation8 + $0x60] sm:$0xff]   ;;  %s551_s28 = scalar_lea.vmem [#allocation20], %s1888_s23  ;;  %s3468_s20 = sld [smem:[#allocation35_spill]] }
 0x157   : > { %2107 = vmatpush3.bf16.msra.mxu1 %v2349_v6  ;;  %2122 = vmatprep.mubr.msk.bf16.mxu1 %vm2849_vm0, %v2848_v0  ;;  %v2361_v22 = vld [vmem:[#allocation8 + $0x18] sm:$0xff]   ;;  %v2364_v25 = vld [vmem:[#allocation8 + $0x20] sm:$0xff]   ;;  %v2365_v26 = vld [vmem:[#allocation8 + $0xb0] sm:$0xff]   ;;  %v684_v45 = vadd.s32 4294967293, %v3316_v38  ;;  %vm685_vm3 = vcmp.ge.s32.totalorder %v683_v44, 0  ;;  %vm1057_vm8 = vcmp.ge.s32.totalorder %v1055_v35, 0 }
 0x158   : > { %2108 = vmatprep.subr.bf16.mxu1 %v2848_v0  ;;  %2097 = vmatmul.mubr.msk.bf16.vlgmr.msra.gmra.mrb[0].mxu0 %vm574_vm2, %v573_v13  ;;  %v2366_v27 = vld [vmem:[#allocation8 + $0x68] sm:$0xff]   ;;  %v2368_v29 = vld [vmem:[#allocation8 + $0xb8] sm:$0xff]   ;;  %v2369_v30 = vld [vmem:[#allocation8 + $0x70] sm:$0xff]   ;;  %s1694_s13 = sshll.u32 %s551_s28, 4  ;;  %s1680_s2 = scalar_lea.sflag [#allocation4], %s3264_s12  ;;  %s3365_s13 = int_to_ptr.vmem [resolvable:$true] %s1694_s13 }
 0x159   : > { %998 = vrot.lane.b32.xlu0 %v573_v13, %s2850_s0  ;;  %2000 = vmatpush3.bf16.msra.mxu0 %v2352_v12  ;;  %v2367_v28 = vld [vmem:[#allocation8 + $0x28] sm:$0xff]   ;;  %v2370_v31 = vld [vmem:[#allocation8 + $0x30] sm:$0xff]   ;;  %v2371_v32 = vld [vmem:[#allocation8 + $0x78] sm:$0xff]   ;;  %vm688_vm4 = vcmp.lt.s32.totalorder %v684_v45, 8  ;;  %s2731_s0 = scalar_lea.vmem %s3365_s13, 128  ;;  %p3470_p9 = scmp.ne.s32.totalorder %s3458_s25, 0 }
 0x15a   : > { %2001 = vmatprep.subr.bf16.mxu0 %v2354_v14  ;;  %v2372_v33 = vld [vmem:[#allocation8 + $0x38] sm:$0xff]   ;;  %v2374_v34 = vld [vmem:[#allocation14 + $0x40] sm:$0xff]   ;;  %v990_v56 = vld [vmem:[#allocation11] sm:$0x3]  ;;  %s1991_s24 = sshll.u32 %s3467_s16, 7  ;;  %p2732_p2 = scmp.ne.s32.totalorder %s3365_s13, %s2731_s0 }
 0x15b   : > { %2109 = vmatpush3.bf16.msra.mxu1 %v2350_v11  ;;  %v1903_v43 = vld [vmem:[#allocation7] ss:$0 sm:$0xff]  ;;  %v1006_v59 = vsel %vm1004_vm5, %v990_v56, 0  ;;  %vm1929_vm6 = vmpackc.low %vm688_vm4, %vm685_vm3  ;;  %v2376_v1 = vld [vmem:[#allocation14] sm:$0xff]   ;;  %s2851_s23 = smov [#allocation20]  }
 0x15c   : > { %2110 = vmatprep.subr.bf16.mxu1 %v2848_v0  ;;  %v2377_v2 = vld [vmem:[#allocation14 + $0x48] sm:$0xff]   ;;  %v2373_v5 = vld [vmem:[#allocation14 + $0x80] sm:$0xff]   ;;  %v2378_v7 = vld [vmem:[#allocation14 + $0x90] sm:$0xff]   ;;  %s3469_s1 = smov %s3468_s20  ;;  %s3363_s15 = scalar_lea.hbm %s3468_s20, %s1991_s24 }
 0x15d   : > { %2002 = vmatpush3.bf16.msra.mxu0 %v2355_v16  ;;  %v2379_v3 = vld [vmem:[#allocation14 + $0x8] sm:$0xff]   ;;  %v2380_v8 = vld [vmem:[#allocation14 + $0x50] sm:$0xff]   ;;  %v2381_v9 = vld [vmem:[#allocation14 + $0x98] sm:$0xff]   ;;  %p2733_p10 = pnand %p2732_p2, %p3470_p9  ;;  %s2735_s16 = sshll.u32 %s2851_s23, 4  ;;  %s2736_s16 = int_to_ptr.vmem [resolvable:$false] %s2735_s16 }
 0x15e   : > { %2003 = vmatprep.subr.bf16.mxu0 %v2357_v17  ;;  %v2375_v6 = vld [vmem:[#allocation14 + $0x88] sm:$0xff]   ;;  %v2382_v10 = vld [vmem:[#allocation14 + $0x10] sm:$0xff]   ;;  %v2383_v11 = vld [vmem:[#allocation14 + $0x58] sm:$0xff]   ;;  %s2737_s3 = scalar_lea.vmem %s2736_s16, 256  ;;  %p2738_p0 = scmp.lt.s32.totalorder %s3365_s13, %s2736_s16 }
 0x15f   : > { %2111 = vmatpush3.bf16.msra.mxu1 %v2353_v15  ;;  %v2384_v12 = vld [vmem:[#allocation14 + $0xa0] sm:$0xff]   ;;  %v2385_v13 = vld [vmem:[#allocation14 + $0x18] sm:$0xff]   ;;  %v2387_v15 = vld [vmem:[#allocation14 + $0xa8] sm:$0xff]   ;;  %p2734_p12 = pneg %p2733_p10  ;;  %p2739_p7 = scmp.lt.s32.totalorder %s2737_s3, %s2731_s0 }
 0x160   : > { %2112 = vmatprep.subr.bf16.mxu1 %v2848_v0  ;;  %v2386_v14 = vld [vmem:[#allocation14 + $0x60] sm:$0xff]   ;;  %v2389_v17 = vld [vmem:[#allocation14 + $0x68] sm:$0xff]  }
 0x161   : > { %2004 = vmatpush3.bf16.msra.mxu0 %v2358_v19  ;;  %v2388_v16 = vld [vmem:[#allocation14 + $0x20] sm:$0xff]   ;;  %v2391_v19 = vld [vmem:[#allocation14 + $0x28] sm:$0xff]   ;;  %p2740_p5 = por %p2739_p7, %p2738_p0 }
 0x162   : > { %2005 = vmatprep.subr.bf16.mxu0 %v2360_v21  ;;  %v2393_v21 = vld [vmem:[#allocation14 + $0xb8] sm:$0xff]   ;;  %v2397_v56 = vld [vmem:[#allocation17 + $0x80] sm:$0xff]  }
 0x163   : > { %2113 = vmatpush3.bf16.msra.mxu1 %v2356_v18  ;;  %v2390_v18 = vld [vmem:[#allocation14 + $0xb0] sm:$0xff]   ;;  %p2741_p8 = pnand %p2740_p5, %p2734_p12 }
 0x164   : > { %2114 = vmatprep.subr.bf16.mxu1 %v2848_v0 }
 0x165   : > { %2006 = vmatpush3.bf16.msra.mxu0 %v2361_v22  ;;  %v2394_v22 = vld [vmem:[#allocation14 + $0x30] sm:$0xff]  }
 0x166   : > { %2007 = vmatprep.subr.bf16.mxu0 %v2363_v24  ;;  %v2396_v24 = vld [vmem:[#allocation14 + $0x38] sm:$0xff]  }
 0x167   : > { %2115 = vmatpush3.bf16.msra.mxu1 %v2359_v20  ;;  %v2392_v20 = vld [vmem:[#allocation14 + $0x70] sm:$0xff]  }
 0x168   : > { %2116 = vmatprep.subr.bf16.mxu1 %v2848_v0 }
 0x169   : > { %2008 = vmatpush3.bf16.msra.mxu0 %v2364_v25  ;;  %v2398_v25 = vld [vmem:[#allocation17 + $0x40] sm:$0xff]  }
 0x16a   : > { %2009 = vmatprep.subr.bf16.mxu0 %v2366_v27  ;;  %v1904_v27 = vld [vmem:[#allocation10] ss:$0 sm:$0xff] }
 0x16b   : > { %2117 = vmatpush3.bf16.msra.mxu1 %v2362_v23  ;;  %v2395_v23 = vld [vmem:[#allocation14 + $0x78] sm:$0xff]  }
 0x16c   : > { %2118 = vmatprep.subr.bf16.mxu1 %v2848_v0 }
 0x16d   : > { %2010 = vmatpush3.bf16.msra.mxu0 %v2367_v28 }
 0x16e   : > { %2011 = vmatprep.subr.bf16.mxu0 %v2369_v30 }
 0x16f   : > { %2119 = vmatpush3.bf16.msra.mxu1 %v2365_v26 }
 0x170   : > { %2120 = vmatprep.subr.bf16.mxu1 %v2848_v0 }
 0x171   : > { %2012 = vmatpush3.bf16.msra.mxu0 %v2370_v31 }
 0x172   : > { %2013 = vmatprep.subr.bf16.mxu0 %v2371_v32  ;;  %v1932_v32 = vld [vmem:[#allocation13] ss:$0 sm:$0xff] }
 0x173   : > { %2121 = vmatpush3.bf16.msra.mxu1 %v2368_v29 }
 0x174   : > { %2126 = vmatprep.subr.bf16.mxu1 %v2848_v0 }
 0x175   : > { %2014 = vmatpush3.bf16.msra.mxu0 %v2372_v33 }
 0x176   : > { %2032 = vmatprep.subr.bf16.mxu0 %v2374_v34 }
 0x1cb   : > { %v999_v4 = vpop.permute.xlu0 %998 }
 0x229   : > { %v662_v37 = vpop.f32.mrb[0].mxu1 }
 0x22a   : > { %v2104_v39 = vpop.f32.mrb[1].mxu1 }
 0x22b   : > { %v665_v40 = vpop.f32.mrb[2].mxu1  ;;  %v616_v42 = vpop.f32.mrb[0].mxu0 }
 0x22c   : > { %v2105_v41 = vpop.f32.mrb[3].mxu1  ;;  %v663_v46 = vadd.f32 %v662_v37, %v616_v42  ;;  %v2098_v47 = vpop.f32.mrb[1].mxu0 }
 0x22d   : > { %v619_v48 = vpop.f32.mrb[2].mxu0  ;;  %v1056_v41 = vadd.s32 4294967294, %v3316_v38 }
 0x22e   : > { %v676_v49 = vadd.f32 %v1903_v43, %v663_v46  ;;  %v666_v50 = vadd.f32 %v665_v40, %v619_v48  ;;  %v2099_v51 = vpop.f32.mrb[3].mxu0 }
 0x22f   : > { %vm1060_vm9 = vcmp.lt.s32.totalorder %v1056_v41, 8 }
 0x230   : > { %v677_v52 = vadd.f32 %v1903_v43, %v666_v50  ;;  %v695_v53 = vsel %vm685_vm3, %v676_v49, 0.0  ;;  %vm1959_vm11 = vmpackc.low %vm1060_vm9, %vm1057_vm8 }
 0x232   : > { %v696_v54 = vsel %vm688_vm4, %v677_v52, 0.0  ;;  %v1930_v55 = vpack.c.bf16 %v677_v52, %v676_v49 }
 0x233   : > { %v697_v57 = vpack.c.bf16 %v696_v54, %v695_v53 }
 0x235   : > { %v707_v58 = vrot.slane %v697_v57, 1  ;;  %v701_v60 = vshll.u32 %v697_v57, 16  ;;  %v699_v61 = vshrl.u32 %v697_v57, 16 }
 0x237   : > { %2123 = vmatmul.mubr.bf16.vlgmr.msra.gmra.mrb[4].mxu1 %v707_v58  ;;  %v703_v62 = vrot.slane %v701_v60, 1 }
 0x238   : > { %2127 = vmatpush3.bf16.msra.mxu1 %v1006_v59  ;;  %2128 = vmatprep.mubr.msk.bf16.mxu1 %vm2849_vm0, %v2848_v0 }
 0x239   : > { %v704_v63 = vor.u32 %v703_v62, %v699_v61  ;;  %2132 = vmatprep.subr.bf16.mxu1 %v2848_v0  ;;  %v2399_v62 = vld [vmem:[#allocation17 + $0x88] sm:$0xff]  }
 0x23b   : > { %940 = vmatprep.mubr.bf16.mxu0 %v704_v63 }
 0x23c   : > { %1931 = vmatmul.mubr.msk.bf16.vlgmr.msra.gmra.mrb[4].mxu0 %vm1929_vm6, %v1930_v55 }
 0x23d   : > { %2033 = vmatpush3.bf16.msra.mxu0 %v2376_v1  ;;  %v2400_v1 = vld [vmem:[#allocation17] sm:$0xff]  }
 0x23e   : > { %2034 = vmatprep.subr.bf16.mxu0 %v2377_v2  ;;  %v2401_v2 = vld [vmem:[#allocation17 + $0x48] sm:$0xff]  }
 0x241   : > { %2035 = vmatpush3.bf16.msra.mxu0 %v2379_v3  ;;  %v2402_v3 = vld [vmem:[#allocation17 + $0x90] sm:$0xff]  }
 0x242   : > { %2036 = vmatprep.subr.bf16.mxu0 %v2380_v8  ;;  %v2407_v8 = vld [vmem:[#allocation17 + $0x58] sm:$0xff]  }
 0x243   : > { %2129 = vmatmul.mubr.msk.bf16.vlgmr.msra.gmra.mrb[4].mxu1 %vm1000_vm7, %v999_v4  ;;  %v2403_v4 = vld [vmem:[#allocation17 + $0x8] sm:$0xff]  }
 0x244   : > { %2133 = vmatpush3.bf16.msra.mxu1 %v2373_v5  ;;  %2148 = vmatprep.mubr.msk.bf16.mxu1 %vm2849_vm0, %v2848_v0  ;;  %v2404_v5 = vld [vmem:[#allocation17 + $0x50] sm:$0xff]  }
 0x245   : > { %2134 = vmatprep.subr.bf16.mxu1 %v2848_v0  ;;  %2037 = vmatpush3.bf16.msra.mxu0 %v2382_v10  ;;  %v2409_v10 = vld [vmem:[#allocation17 + $0x18] sm:$0xff]  }
 0x246   : > { %2038 = vmatprep.subr.bf16.mxu0 %v2383_v11  ;;  %v2410_v11 = vld [vmem:[#allocation17 + $0x60] sm:$0xff]  }
 0x248   : > { %2135 = vmatpush3.bf16.msra.mxu1 %v2375_v6  ;;  %v2405_v6 = vld [vmem:[#allocation17 + $0x98] sm:$0xff]  }
 0x249   : > { %2136 = vmatprep.subr.bf16.mxu1 %v2848_v0  ;;  %2039 = vmatpush3.bf16.msra.mxu0 %v2385_v13  ;;  %v2412_v13 = vld [vmem:[#allocation17 + $0x20] sm:$0xff]  }
 0x24a   : > { %2040 = vmatprep.subr.bf16.mxu0 %v2386_v14  ;;  %v2413_v14 = vld [vmem:[#allocation17 + $0x68] sm:$0xff]  }
 0x24c   : > { %2137 = vmatpush3.bf16.msra.mxu1 %v2378_v7  ;;  %v2406_v7 = vld [vmem:[#allocation17 + $0x10] sm:$0xff]  }
 0x24d   : > { %2138 = vmatprep.subr.bf16.mxu1 %v2848_v0  ;;  %2041 = vmatpush3.bf16.msra.mxu0 %v2388_v16  ;;  %v2415_v16 = vld [vmem:[#allocation17 + $0x28] sm:$0xff]  }
 0x24e   : > { %2042 = vmatprep.subr.bf16.mxu0 %v2389_v17  ;;  %v2416_v17 = vld [vmem:[#allocation17 + $0x70] sm:$0xff]  }
 0x250   : > { %2139 = vmatpush3.bf16.msra.mxu1 %v2381_v9  ;;  %v2408_v9 = vld [vmem:[#allocation17 + $0xa0] sm:$0xff]  }
 0x251   : > { %2140 = vmatprep.subr.bf16.mxu1 %v2848_v0  ;;  %2043 = vmatpush3.bf16.msra.mxu0 %v2391_v19  ;;  %v2418_v19 = vld [vmem:[#allocation17 + $0x30] sm:$0xff]  }
 0x252   : > { %2044 = vmatprep.subr.bf16.mxu0 %v2392_v20  ;;  %v2419_v20 = vld [vmem:[#allocation17 + $0x78] sm:$0xff]  }
 0x254   : > { %2141 = vmatpush3.bf16.msra.mxu1 %v2384_v12  ;;  %v2411_v12 = vld [vmem:[#allocation17 + $0xa8] sm:$0xff]  }
 0x255   : > { %2142 = vmatprep.subr.bf16.mxu1 %v2848_v0  ;;  %2045 = vmatpush3.bf16.msra.mxu0 %v2394_v22 }
 0x256   : > { %2046 = vmatprep.subr.bf16.mxu0 %v2395_v23 }
 0x258   : > { %2143 = vmatpush3.bf16.msra.mxu1 %v2387_v15  ;;  %v2414_v15 = vld [vmem:[#allocation17 + $0xb0] sm:$0xff]  }
 0x259   : > { %2144 = vmatprep.subr.bf16.mxu1 %v2848_v0  ;;  %2047 = vmatpush3.bf16.msra.mxu0 %v2396_v24 }
 0x25a   : > { %2063 = vmatprep.subr.bf16.mxu0 %v2398_v25 }
 0x25c   : > { %2145 = vmatpush3.bf16.msra.mxu1 %v2390_v18  ;;  %v2417_v18 = vld [vmem:[#allocation17 + $0xb8] sm:$0xff]  }
 0x25d   : > { %2146 = vmatprep.subr.bf16.mxu1 %v2848_v0 }
 0x260   : > { %2147 = vmatpush3.bf16.msra.mxu1 %v2393_v21  ;;  %v2420_v21 = vld [vmem:[#allocation17 + $0x38] sm:$0xff]  }
 0x261   : > { %2152 = vmatprep.subr.bf16.mxu1 %v2848_v0 }
 0x30f   : > { %v2015_v26 = vpop.f32.mrb[4].mxu0 }
 0x310   : > { %v2016_v28 = vpop.f32.mrb[5].mxu0 }
 0x311   : > { %v2017_v29 = vadd.f32 %v2016_v28, %v2015_v26  ;;  %v2018_v30 = vpop.f32.mrb[6].mxu0 }
 0x312   : > { %v2019_v31 = vpop.f32.mrb[7].mxu0 }
 0x313   : > { %v943_v33 = vadd.f32 %v2017_v29, %v1904_v27  ;;  %v2020_v34 = vadd.f32 %v2019_v31, %v2018_v30 }
 0x315   : > { %v946_v37 = vadd.f32 %v2020_v34, %v1904_v27  ;;  %v2172_v39 = vadd.f32 %v1932_v32, %v943_v33  ;;  %v1934_v27 = vld [vmem:[#allocation16] ss:$0 sm:$0xff] }
 0x316   : > { %v1042_v40 = vpop.f32.mrb[4].mxu1 }
 0x317   : > { %v2173_v42 = vadd.f32 %v2172_v39, %v1042_v40  ;;  %v2130_v43 = vpop.f32.mrb[5].mxu1  ;;  %v2174_v44 = vadd.f32 %v1932_v32, %v946_v37  ;;  %v1365_v32 = vadd.s32 4294967295, %v3316_v38 }
 0x318   : > { %v1045_v45 = vpop.f32.mrb[6].mxu1 }
 0x319   : > { %v1051_v46 = vmax.f32 %v2173_v42, 0.0  ;;  %v2175_v47 = vadd.f32 %v2174_v44, %v1045_v45  ;;  %v2131_v48 = vpop.f32.mrb[7].mxu1  ;;  %vm1369_vm13 = vcmp.lt.s32.totalorder %v1365_v32, 8 }
 0x31b   : > { %v1067_v49 = vsel %vm1057_vm8, %v1051_v46, 0.0  ;;  %v1052_v50 = vmax.f32 %v2175_v47, 0.0 }
 0x31c   : > { %v1672_v53 = vrot.slane %v1067_v49, 2 }
 0x31d   : > { %v1068_v51 = vsel %vm1060_vm9, %v1052_v50, 0.0  ;;  %v1960_v52 = vpack.c.bf16 %v1052_v50, %v1051_v46 }
 0x31e   : > { %v1069_v54 = vpack.c.bf16 %v1068_v51, %v1067_v49  ;;  %v1673_v55 = vrot.slane %v1068_v51, 2 }
 0x320   : > { %v1079_v57 = vrot.slane %v1069_v54, 1  ;;  %v1073_v58 = vshll.u32 %v1069_v54, 16  ;;  %v3341_v59 = vsel %vm1671_vm10, %v1672_v53, %v1673_v55  ;;  %v1071_v60 = vshrl.u32 %v1069_v54, 16 }
 0x322   : > { %2149 = vmatmul.mubr.bf16.vlgmr.msra.gmra.mrb[8].mxu1 %v1079_v57  ;;  %v1075_v61 = vrot.slane %v1073_v58, 1 }
 0x323   : > { %2153 = vmatpush3.bf16.msra.mxu1 %v2397_v56  ;;  %2168 = vmatprep.mubr.msk.bf16.mxu1 %vm2849_vm0, %v2848_v0 }
 0x324   : > { %v1076_v63 = vor.u32 %v1075_v61, %v1071_v60  ;;  %2154 = vmatprep.subr.bf16.mxu1 %v2848_v0 }
 0x326   : > { %1312 = vmatprep.mubr.bf16.mxu0 %v1076_v63 }
 0x327   : > { %1961 = vmatmul.mubr.msk.bf16.vlgmr.msra.gmra.mrb[8].mxu0 %vm1959_vm11, %v1960_v52  ;;  %2155 = vmatpush3.bf16.msra.mxu1 %v2399_v62  ;;  %v1962_v52 = vld [vmem:[#allocation19] ss:$0 sm:$0xff] }
 0x328   : > { %2064 = vmatpush3.bf16.msra.mxu0 %v2400_v1  ;;  %2156 = vmatprep.subr.bf16.mxu1 %v2848_v0 }
 0x329   : > { %2065 = vmatprep.subr.bf16.mxu0 %v2401_v2 }
 0x32b   : > { %2157 = vmatpush3.bf16.msra.mxu1 %v2402_v3 }
 0x32c   : > { %2066 = vmatpush3.bf16.msra.mxu0 %v2403_v4  ;;  %2158 = vmatprep.subr.bf16.mxu1 %v2848_v0 }
 0x32d   : > { %2067 = vmatprep.subr.bf16.mxu0 %v2404_v5 }
 0x32f   : > { %2159 = vmatpush3.bf16.msra.mxu1 %v2405_v6 }
 0x330   : > { %2068 = vmatpush3.bf16.msra.mxu0 %v2406_v7  ;;  %2160 = vmatprep.subr.bf16.mxu1 %v2848_v0 }
 0x331   : > { %2069 = vmatprep.subr.bf16.mxu0 %v2407_v8 }
 0x333   : > { %2161 = vmatpush3.bf16.msra.mxu1 %v2408_v9 }
 0x334   : > { %2070 = vmatpush3.bf16.msra.mxu0 %v2409_v10  ;;  %2162 = vmatprep.subr.bf16.mxu1 %v2848_v0 }
 0x335   : > { %2071 = vmatprep.subr.bf16.mxu0 %v2410_v11 }
 0x337   : > { %2163 = vmatpush3.bf16.msra.mxu1 %v2411_v12 }
 0x338   : > { %2072 = vmatpush3.bf16.msra.mxu0 %v2412_v13  ;;  %2164 = vmatprep.subr.bf16.mxu1 %v2848_v0 }
 0x339   : > { %2073 = vmatprep.subr.bf16.mxu0 %v2413_v14 }
 0x33b   : > { %2165 = vmatpush3.bf16.msra.mxu1 %v2414_v15 }
 0x33c   : > { %2074 = vmatpush3.bf16.msra.mxu0 %v2415_v16  ;;  %2166 = vmatprep.subr.bf16.mxu1 %v2848_v0  ;;  %v1364_v0 = vadd.s32 4294967295, %v3313_v36 }
 0x33d   : > { %2075 = vmatprep.subr.bf16.mxu0 %v2416_v17 }
 0x33e   : > { %vm1366_vm12 = vcmp.ge.s32.totalorder %v1364_v0, 0 }
 0x33f   : > { %2167 = vmatpush3.bf16.msra.mxu1 %v2417_v18  ;;  %vm1987_vm14 = vmpackc.low %vm1369_vm13, %vm1366_vm12 }
 0x340   : > { %2076 = vmatpush3.bf16.msra.mxu0 %v2418_v19 }
 0x341   : > { %2077 = vmatprep.subr.bf16.mxu0 %v2419_v20 }
 0x344   : > { %2078 = vmatpush3.bf16.msra.mxu0 %v2420_v21 }
 0x3f5   : > { %v1355_v22 = vpop.f32.mrb[8].mxu1 }
 0x3f6   : > { %v2150_v23 = vpop.f32.mrb[9].mxu1 }
 0x3f7   : > { %v1358_v24 = vpop.f32.mrb[10].mxu1 }
 0x3f8   : > { %v2151_v25 = vpop.f32.mrb[11].mxu1 }
 0x3fa   : > { %v2048_v26 = vpop.f32.mrb[8].mxu0 }
 0x3fb   : > { %v2049_v28 = vpop.f32.mrb[9].mxu0 }
 0x3fc   : > { %v2050_v29 = vadd.f32 %v2049_v28, %v2048_v26  ;;  %v2051_v30 = vpop.f32.mrb[10].mxu0 }
 0x3fd   : > { %v2052_v31 = vpop.f32.mrb[11].mxu0 }
 0x3fe   : > { %v1315_v33 = vadd.f32 %v2050_v29, %v1934_v27  ;;  %v2053_v34 = vadd.f32 %v2052_v31, %v2051_v30 }
 0x400   : > { %v1356_v35 = vadd.f32 %v1355_v22, %v1315_v33  ;;  %v1318_v37 = vadd.f32 %v2053_v34, %v1934_v27 }
 0x402   : > { %v1359_v39 = vadd.f32 %v1358_v24, %v1318_v37  ;;  %v1376_v40 = vsel %vm1366_vm12, %v1356_v35, 0.0 }
 0x404   : > { %v1377_v41 = vsel %vm1369_vm13, %v1359_v39, 0.0  ;;  %v1988_v42 = vpack.c.bf16 %v1359_v39, %v1356_v35 }
 0x405   : > { %v1378_v43 = vpack.c.bf16 %v1377_v41, %v1376_v40 }
 0x407   : > { %v1388_v44 = vrot.slane %v1378_v43, 1  ;;  %v1382_v45 = vshll.u32 %v1378_v43, 16  ;;  %v1380_v46 = vshrl.u32 %v1378_v43, 16 }
 0x409   : > { %2169 = vmatmul.mubr.bf16.vlgmr.msra.gmra.mrb[12].mxu1 %v1388_v44  ;;  %v1384_v47 = vrot.slane %v1382_v45, 1 }
 0x40b   : > { %v1385_v36 = vor.u32 %v1384_v47, %v1380_v46 }
 0x40d   : > { %1621 = vmatprep.mubr.bf16.mxu0 %v1385_v36 }
 0x40e   : > { %1989 = vmatmul.mubr.msk.bf16.vlgmr.msra.gmra.mrb[12].mxu0 %vm1987_vm14, %v1988_v42 }
 0x4dc   : > { %v1663_v38 = vpop.f32.mrb[12].mxu1 }
 0x4dd   : > { %v2170_v48 = vpop.f32.mrb[13].mxu1 }
 0x4de   : > { %v1666_v49 = vpop.f32.mrb[14].mxu1 }
 0x4df   : > { %v2171_v50 = vpop.f32.mrb[15].mxu1 }
 0x4e1   : > { %v2079_v51 = vpop.f32.mrb[12].mxu0 }
 0x4e2   : > { %v2080_v53 = vpop.f32.mrb[13].mxu0 }
 0x4e3   : > { %v2081_v54 = vadd.f32 %v2080_v53, %v2079_v51  ;;  %v2082_v55 = vpop.f32.mrb[14].mxu0 }
 0x4e4   : > { %v2083_v56 = vpop.f32.mrb[15].mxu0 }
 0x4e5   : > { %v1624_v57 = vadd.f32 %v2081_v54, %v1962_v52 }
 0x4e7   : > { %v1664_v58 = vadd.f32 %v1663_v38, %v1624_v57 }
 0x4e9   : > { %v1676_v60 = vadd.f32 %v3341_v59, %v1664_v58 }
 0x4eb   : > { %v1677_v61 = vmax.f32 %v1676_v60, 0.0 }
 0x4ed   : > { %1678 = vst [vmem:[%s551_s28] sm:$0xff] %v1677_v61 }
 0x4ee   : > { %2744 = shalt.err (!%p2741_p8)
}
 0x4ef   : > { %s2745_s12 = scalar_lea.hbm %s3363_s15, 128  ;;  %s2749_s11 = scalar_lea.hbm %s3469_s1, 256 }
 0x4f0   : > { %p2746_p3 = scmp.ne.s32.totalorder %s3363_s15, %s2745_s12  ;;  %p2750_p13 = scmp.lt.u32.totalorder %s3363_s15, %s3469_s1 }
 0x4f1   : > { %p2751_p1 = scmp.lt.u32.totalorder %s2749_s11, %s2745_s12  ;;  %p2753_p2 = scmp.lt.u32.totalorder %s2745_s12, %s3363_s15 }
 0x4f2   : > { %p2747_p11 = pnand %p2746_p3, %p3470_p9 }
 0x4f3   : > { %p2752_p4 = por %p2751_p1, %p2750_p13 }
 0x4f4   : > { %p2748_p6 = pneg %p2747_p11 }
 0x4f5   : > { %p2754_p10 = por %p2753_p2, %p2752_p4 }
 0x4f7   : > { %p2755_p12 = pnand %p2754_p10, %p2748_p6 }
 0x4f9   : > { %2758 = shalt.err (!%p2755_p12)
}
 0x4fa   : > { %2222 = dma.vmem_to_hbm [thread:$0]  (%p3470_p9), %s3365_s13, 128, %s3363_s15, %s1680_s2  }
 0x4fb PF: > { %s1706_s3 = sand.u32 1, %s2813_s17   ;;  %p3471_p0 = scmp.ne.s32.totalorder %s3459_s29, 0 }
 0x4fc   : > { %p3472_p7 = scmp.ge.s32.totalorder %s2833_s22, 2  ;;  %s1707_s0 = scalar_lea.sflag [#allocation4], %s1706_s3 }
 0x4fe   : > { %p2260_p5 = pnand %p3472_p7, %p3471_p0 }
 0x500   : > { %2808 = dma.done.wait (!%p2260_p5), %s1707_s0, 128  }
 0x501   : > { %2810 = vsyncadd (!%p2260_p5), %s1707_s0, 4294967168  ;;  %s32_s22 = sadd.s32 1, %s2833_s22   ;;  %s3473_s17 = smov %s2817_s18 }
 0x502   : > { %p29_p8 = scmp.ge.s32.totalorder %s32_s22, 4   ;;  %s3474_s18 = smov %s2821_s19 }
 0x503   : > { %s3475_s19 = smov %s3208_s14  ;;  %s3476_s20 = smov %s2829_s21 }
 0x504   : > { %s3477_s21 = smov %s3479_s30  ;;  %31 = sbr.rel (!%p29_p8) target bundleno = 17 (0x11), region = 150 }
 0x50b   :  { %1712 = vsyncpa [#allocation3], 1 }
 0x50c   :  { %1714 = vsyncpa [#allocation3 + $0x1], 1 }
 0x50d   :  { %1715 = vsyncpa [#allocation6], 1 }
 0x50e   :  { %1716 = vsyncpa [#allocation9], 1 }
 0x50f   :  { %1717 = vsyncpa [#allocation12], 1 }
 0x510   :  { %1718 = vsyncpa [#allocation15], 1 }
 0x511   :  { %1719 = vsyncpa [#allocation18], 1 }
 0x512   :  { %1720 = vsyncpa [#allocation4], 1 }
 0x513   :  { %1722 = vsyncpa [#allocation4 + $0x1], 1 }

// kernel: tpu_custom_call.1
= control target key start
LH: loop header
LB: loop body
LE: loop exit
PB: predicated region body
PF: predicated region fallthrough
CT: control target
= control target key end

     0   :  { %s3412_s0 = inlined_call_operand.hbm [shape: bf16[2,16,8], index: 0, kind: input, shape index: {}]   ;;  %s3413_s1 = inlined_call_operand.hbm [shape: bf16[16,128], index: 1, kind: input, shape index: {}]   ;;  %s3414_s2 = inlined_call_operand.hbm [shape: f32[1,128], index: 2, kind: input, shape index: {}]   ;;  %s3415_s3 = inlined_call_operand.hbm [shape: bf16[384,128], index: 3, kind: input, shape index: {}]   ;;  %s3416_s4 = inlined_call_operand.hbm [shape: f32[1,128], index: 4, kind: input, shape index: {}]   ;;  %s3417_s5 = inlined_call_operand.hbm [shape: bf16[4,128], index: 5, kind: input, shape index: {}]   ;;  %s3418_s6 = inlined_call_operand.hbm [shape: f32[1,128], index: 6, kind: input, shape index: {}]   ;;  %s3419_s7 = inlined_call_operand.hbm [shape: bf16[384,128], index: 7, kind: input, shape index: {}]   ;;  %s3420_s8 = inlined_call_operand.hbm [shape: f32[1,128], index: 8, kind: input, shape index: {}]   ;;  %s3421_s9 = inlined_call_operand.hbm [shape: bf16[384,128], index: 9, kind: input, shape index: {}]   ;;  %s3422_s10 = inlined_call_operand.hbm [shape: f32[1,128], index: 10, kind: input, shape index: {}]   ;;  %s3423_s11 = inlined_call_operand.hbm [shape: f32[2,8,128], index: 11, kind: output, shape index: {}]  }
   0x1   :  { %3437 = sst [smem:[#allocation31_spill]] %s3412_s0 }
   0x2   :  { %3438 = sst [smem:[#allocation32_spill]] %s3413_s1 }
   0x3   :  { %3439 = sst [smem:[#allocation33_spill]] %s3414_s2 }
   0x4   :  { %3440 = sst [smem:[#allocation34_spill]] %s3415_s3 }
   0x5   :  { %3441 = sst [smem:[#allocation35_spill]] %s3423_s11 }
   0x6   :  { %16 = vsyncpa [#allocation3], 0 }
   0x7   :  { %18 = vsyncpa [#allocation3 + $0x1], 0 }
   0x8   :  { %19 = vsyncpa [#allocation6], 0 }
   0x9   :  { %20 = vsyncpa [#allocation9], 0 }
   0xa   :  { %21 = vsyncpa [#allocation12], 0 }
   0xb   :  { %22 = vsyncpa [#allocation15], 0 }
   0xc   :  { %23 = vsyncpa [#allocation18], 0 }
   0xd   :  { %24 = vsyncpa [#allocation4], 0 }
   0xe   :  { %26 = vsyncpa [#allocation4 + $0x1], 0  ;;  %s2912_s17 = smov 0   ;;  %s2914_s18 = smov 0  }
   0xf   :  { %s2916_s19 = smov 0   ;;  %s2918_s20 = smov 0  }
  0x10   :  { %s2920_s21 = smov 0   ;;  %s2922_s22 = smov 0  }
  0x11 LB: > { %3442 = sst [smem:[#allocation28_spill]] %s2825_s20  ;;  %s3424_s23 = sadd.s32 4294967295, %s2833_s22   ;;  %s2833_s22 = sphi %s2922_s22, %s32_s22   ;;  %s2829_s21 = sphi %s2920_s21, %s3477_s21   ;;  %s2825_s20 = sphi %s2918_s20, %s3476_s20   ;;  %s2821_s19 = sphi %s2916_s19, %s3475_s19   ;;  %s2817_s18 = sphi %s2914_s18, %s3474_s18   ;;  %s2813_s17 = sphi %s2912_s17, %s3473_s17  }
  0x12   : > { %p1872_p0 = scmp.ge.s32.totalorder %s2833_s22, 1  ;;  %p2946_p1 = scmp.eq.s32.totalorder %s3424_s23, 0 }
  0x13   : > { %p313_p2 = scmp.lt.s32.totalorder %s2833_s22, 3  ;;  %s2835_s26 = smov [#allocation5]  }
  0x14   : > { %s3443_s24 = scalar_select %p2946_p1, 1, 0 }
  0x15   : > { %p2951_p3 = pnand %p1872_p0, %p313_p2  ;;  %s325_s27 = sshll.u32 %s2835_s26, 4  ;;  %s2955_s27 = int_to_ptr.vmem [resolvable:$true] %s325_s27 }
  0x16   : > { %3444 = sst [smem:[#allocation29_spill]] %s3443_s24  ;;  %s2836_s29 = smov [#allocation8]  }
  0x17   : > { %s3445_s25 = scalar_select %p2951_p3, 1, 0 }
  0x18   : > { %p2224_p4 = pneg %p2951_p3  ;;  %s349_s30 = sshll.u32 %s2836_s29, 4  ;;  %s2966_s30 = int_to_ptr.vmem [resolvable:$true] %s349_s30 }
  0x19   : > { %3446 = sst [smem:[#allocation30_spill]] %s3445_s25  ;;  %s2837_s12 = smov [#allocation11]  }
  0x1a   : > { %p2962_p6 = pnand %p2224_p4, %p2946_p1  ;;  %s2968_s13 = sshll.u32 %s2837_s12, 4  ;;  %s375_s13 = int_to_ptr.vmem [resolvable:$true] %s2968_s13 }
  0x1b   : > { %s3448_s1 = sld [smem:[#allocation32_spill]] }
  0x1c   : > { %p2978_p8 = pneg %p2962_p6 }
  0x21   : > { %s2421_s16 = scalar_lea.hbm %s3448_s1, 128 }
  0x22   : > { %p2422_p7 = scmp.ne.s32.totalorder %s3448_s1, %s2421_s16  ;;  %p2428_p11 = scmp.lt.u32.totalorder %s2421_s16, %s3448_s1 }
  0x24   : > { %p2424_p9 = pnand %p2978_p8, %p2422_p7 }
  0x26   : > { %p2425_p10 = pneg %p2424_p9 }
  0x28   : > { %p2430_p12 = pnand %p2428_p11, %p2425_p10 }
  0x2a   : > { %2433 = shalt.err (!%p2430_p12)
}
  0x2b   : > { %s2434_s23 = scalar_lea.vmem %s2955_s27, 128  ;;  %p2442_p4 = scmp.lt.s32.totalorder %s2955_s27, %s2955_s27 }
  0x2c   : > { %p2435_p13 = scmp.ne.s32.totalorder %s2955_s27, %s2434_s23  ;;  %p2443_p5 = scmp.lt.s32.totalorder %s2434_s23, %s2434_s23 }
  0x2e   : > { %p2437_p0 = pnand %p2435_p13, %p2978_p8  ;;  %p2444_p7 = por %p2443_p5, %p2442_p4 }
  0x30   : > { %p2438_p2 = pneg %p2437_p0 }
  0x32   : > { %p2445_p9 = pnand %p2444_p7, %p2438_p2 }
  0x34   : > { %2448 = shalt.err (!%p2445_p9)
}
  0x35   : > { %s3433_s14 = smov 64   ;;  %s3435_s15 = smov 4  }
  0x36   : > { %2227 = dma.hbm_to_vmem [thread:$0]  (!%p2962_p6), %s3448_s1, 128, %s2955_s27, [#allocation6], %s3433_s14, %s3433_s14, %s3435_s15  }
  0x37   : > { %s3450_s3 = sld [smem:[#allocation34_spill]] }
  0x3d   : > { %s2449_s23 = scalar_lea.hbm %s3450_s3, 3072 }
  0x3e   : > { %p2450_p5 = scmp.ne.s32.totalorder %s3450_s3, %s2449_s23  ;;  %p2456_p12 = scmp.lt.u32.totalorder %s2449_s23, %s3450_s3 }
  0x40   : > { %p2452_p10 = pnand %p2450_p5, %p2978_p8 }
  0x42   : > { %p2453_p11 = pneg %p2452_p10 }
  0x44   : > { %p2458_p13 = pnand %p2456_p12, %p2453_p11 }
  0x46   : > { %2461 = shalt.err (!%p2458_p13)
}
  0x47   : > { %s2462_s27 = scalar_lea.vmem %s2966_s30, 3072  ;;  %p2470_p7 = scmp.lt.s32.totalorder %s2966_s30, %s2966_s30 }
  0x48   : > { %p2463_p0 = scmp.ne.s32.totalorder %s2966_s30, %s2462_s27  ;;  %p2471_p9 = scmp.lt.s32.totalorder %s2462_s27, %s2462_s27 }
  0x4a   : > { %p2465_p2 = pnand %p2463_p0, %p2978_p8  ;;  %p2472_p5 = por %p2471_p9, %p2470_p7 }
  0x4c   : > { %p2466_p4 = pneg %p2465_p2 }
  0x4e   : > { %p2473_p10 = pnand %p2472_p5, %p2466_p4 }
  0x50   : > { %2476 = shalt.err (!%p2473_p10)
}
  0x51   : > { %2233 = dma.hbm_to_vmem [thread:$0]  (!%p2962_p6), %s3450_s3, 3072, %s2966_s30, [#allocation9], %s3433_s14, %s3433_s14, %s3435_s15  }
  0x52   : > { %s2477_s16 = scalar_lea.hbm %s3417_s5, 32 }
  0x53   : > { %p2478_p11 = scmp.ne.s32.totalorder %s3417_s5, %s2477_s16  ;;  %p2484_p0 = scmp.lt.u32.totalorder %s2477_s16, %s3417_s5 }
  0x55   : > { %p2480_p12 = pnand %p2478_p11, %p2978_p8 }
  0x57   : > { %p2481_p13 = pneg %p2480_p12 }
  0x59   : > { %p2486_p2 = pnand %p2484_p0, %p2481_p13 }
  0x5b   : > { %2489 = shalt.err (!%p2486_p2)
}
  0x5c   : > { %s2490_s27 = scalar_lea.vmem %s375_s13, 32  ;;  %p2498_p5 = scmp.lt.s32.totalorder %s375_s13, %s375_s13 }
  0x5d   : > { %p2491_p4 = scmp.ne.s32.totalorder %s375_s13, %s2490_s27  ;;  %p2499_p10 = scmp.lt.s32.totalorder %s2490_s27, %s2490_s27 }
  0x5f   : > { %p2493_p7 = pnand %p2491_p4, %p2978_p8  ;;  %p2500_p3 = por %p2499_p10, %p2498_p5 }
  0x61   : > { %p2494_p9 = pneg %p2493_p7 }
  0x63   : > { %p2501_p1 = pnand %p2500_p3, %p2494_p9 }
  0x65   : > { %2504 = shalt.err (!%p2501_p1)
}
  0x66   : > { %2239 = dma.hbm_to_vmem [thread:$0]  (!%p2962_p6), %s3417_s5, 32, %s375_s13, [#allocation12]  }
  0x67   : > { %s2840_s20 = smov [#allocation14]   ;;  %s2841_s25 = smov [#allocation17]  }
  0x68   : > { %s395_s24 = sshll.u32 %s2840_s20, 4  ;;  %s419_s16 = sshll.u32 %s2841_s25, 4  ;;  %s396_s24 = int_to_ptr.vmem [resolvable:$true] %s395_s24  ;;  %s420_s16 = int_to_ptr.vmem [resolvable:$true] %s419_s16 }
  0x69   : > { %s2505_s12 = scalar_lea.hbm %s3419_s7, 3072 }
  0x6a   : > { %p2506_p1 = scmp.ne.s32.totalorder %s3419_s7, %s2505_s12  ;;  %p2512_p12 = scmp.lt.u32.totalorder %s2505_s12, %s3419_s7 }
  0x6c   : > { %p2508_p3 = pnand %p2506_p1, %p2978_p8 }
  0x6e   : > { %p2509_p11 = pneg %p2508_p3 }
  0x70   : > { %p2514_p13 = pnand %p2512_p12, %p2509_p11 }
  0x72   : > { %2517 = shalt.err (!%p2514_p13)
}
  0x73   : > { %s2518_s13 = scalar_lea.vmem %s396_s24, 3072  ;;  %p2526_p7 = scmp.lt.s32.totalorder %s396_s24, %s396_s24 }
  0x74   : > { %p2519_p0 = scmp.ne.s32.totalorder %s396_s24, %s2518_s13  ;;  %p2527_p9 = scmp.lt.s32.totalorder %s2518_s13, %s2518_s13 }
  0x76   : > { %p2521_p2 = pnand %p2519_p0, %p2978_p8  ;;  %p2528_p5 = por %p2527_p9, %p2526_p7 }
  0x78   : > { %p2522_p4 = pneg %p2521_p2 }
  0x7a   : > { %p2529_p10 = pnand %p2528_p5, %p2522_p4 }
  0x7c   : > { %2532 = shalt.err (!%p2529_p10)
}
  0x7d   : > { %s3451_s0 = smov 64   ;;  %s2533_s29 = scalar_lea.hbm %s3421_s9, 3072 }
  0x7e   : > { %2245 = dma.hbm_to_vmem [thread:$0]  (!%p2962_p6), %s3419_s7, 3072, %s396_s24, [#allocation15], %s3451_s0, %s3451_s0, %s3435_s15  }
  0x7f   : > { %p2534_p1 = scmp.ne.s32.totalorder %s3421_s9, %s2533_s29  ;;  %p2540_p12 = scmp.lt.u32.totalorder %s2533_s29, %s3421_s9 }
  0x81   : > { %p2536_p3 = pnand %p2534_p1, %p2978_p8 }
  0x83   : > { %p2537_p11 = pneg %p2536_p3 }
  0x85   : > { %p2542_p13 = pnand %p2540_p12, %p2537_p11 }
  0x87   : > { %2545 = shalt.err (!%p2542_p13)
}
  0x88   : > { %s2546_s13 = scalar_lea.vmem %s420_s16, 3072  ;;  %p2554_p7 = scmp.lt.s32.totalorder %s420_s16, %s420_s16 }
  0x89   : > { %p2547_p0 = scmp.ne.s32.totalorder %s420_s16, %s2546_s13  ;;  %p2555_p9 = scmp.lt.s32.totalorder %s2546_s13, %s2546_s13 }
  0x8b   : > { %p2549_p2 = pnand %p2547_p0, %p2978_p8  ;;  %p2556_p5 = por %p2555_p9, %p2554_p7 }
  0x8d   : > { %p2550_p4 = pneg %p2549_p2 }
  0x8f   : > { %p2557_p10 = pnand %p2556_p5, %p2550_p4 }
  0x91   : > { %2560 = shalt.err (!%p2557_p10)
}
  0x92   : > { %2251 = dma.hbm_to_vmem [thread:$0]  (!%p2962_p6), %s3421_s9, 3072, %s420_s16, [#allocation18], %s3451_s0, %s3451_s0, %s3435_s15  }
  0x93   : > { %s2842_s20 = smov [#allocation7]   ;;  %s2843_s26 = smov [#allocation10]  }
  0x94   : > { %s339_s25 = sshll.u32 %s2842_s20, 4  ;;  %s363_s29 = sshll.u32 %s2843_s26, 4  ;;  %s340_s25 = int_to_ptr.vmem [resolvable:$true] %s339_s25  ;;  %s364_s29 = int_to_ptr.vmem [resolvable:$true] %s363_s29 }
  0x95   : > { %s3452_s2 = sld [smem:[#allocation33_spill]] }
  0x9b   : > { %s2561_s27 = scalar_lea.hbm %s3452_s2, 16 }
  0x9c   : > { %p2562_p1 = scmp.ne.s32.totalorder %s3452_s2, %s2561_s27  ;;  %p2568_p12 = scmp.lt.u32.totalorder %s2561_s27, %s3452_s2 }
  0x9e   : > { %p2564_p3 = pnand %p2562_p1, %p2978_p8 }
  0xa0   : > { %p2565_p11 = pneg %p2564_p3 }
  0xa2   : > { %p2570_p13 = pnand %p2568_p12, %p2565_p11 }
  0xa4   : > { %2573 = shalt.err (!%p2570_p13)
}
  0xa5   : > { %s2574_s16 = scalar_lea.vmem %s340_s25, 16  ;;  %s2581_s14 = scalar_lea.vmem %s340_s25, 32 }
  0xa6   : > { %p2575_p0 = scmp.ne.s32.totalorder %s340_s25, %s2574_s16  ;;  %p2582_p7 = scmp.lt.s32.totalorder %s340_s25, %s340_s25 }
  0xa7   : > { %p2583_p9 = scmp.lt.s32.totalorder %s2581_s14, %s2574_s16 }
  0xa8   : > { %p2577_p2 = pnand %p2575_p0, %p2978_p8 }
  0xa9   : > { %p2584_p5 = por %p2583_p9, %p2582_p7 }
  0xaa   : > { %p2578_p4 = pneg %p2577_p2 }
  0xac   : > { %p2585_p10 = pnand %p2584_p5, %p2578_p4 }
  0xae   : > { %2588 = shalt.err (!%p2585_p10)
}
  0xaf   : > { %2230 = dma.hbm_to_vmem [thread:$0]  (!%p2962_p6), %s3452_s2, 16, %s340_s25, [#allocation6]  }
  0xb0   : > { %s2589_s23 = scalar_lea.hbm %s3416_s4, 16 }
  0xb1   : > { %p2590_p1 = scmp.ne.s32.totalorder %s3416_s4, %s2589_s23  ;;  %p2596_p12 = scmp.lt.u32.totalorder %s2589_s23, %s3416_s4 }
  0xb3   : > { %p2592_p3 = pnand %p2590_p1, %p2978_p8 }
  0xb5   : > { %p2593_p11 = pneg %p2592_p3 }
  0xb7   : > { %p2598_p13 = pnand %p2596_p12, %p2593_p11 }
  0xb9   : > { %2601 = shalt.err (!%p2598_p13)
}
  0xba   : > { %s2602_s16 = scalar_lea.vmem %s364_s29, 16  ;;  %s2609_s25 = scalar_lea.vmem %s364_s29, 32 }
  0xbb   : > { %p2603_p0 = scmp.ne.s32.totalorder %s364_s29, %s2602_s16  ;;  %p2610_p7 = scmp.lt.s32.totalorder %s364_s29, %s364_s29 }
  0xbc   : > { %p2611_p9 = scmp.lt.s32.totalorder %s2609_s25, %s2602_s16 }
  0xbd   : > { %p2605_p2 = pnand %p2603_p0, %p2978_p8 }
  0xbe   : > { %p2612_p5 = por %p2611_p9, %p2610_p7 }
  0xbf   : > { %p2606_p4 = pneg %p2605_p2 }
  0xc1   : > { %p2613_p10 = pnand %p2612_p5, %p2606_p4 }
  0xc3   : > { %2616 = shalt.err (!%p2613_p10)
}
  0xc4   : > { %2236 = dma.hbm_to_vmem [thread:$0]  (!%p2962_p6), %s3416_s4, 16, %s364_s29, [#allocation9]  }
  0xc5   : > { %s2844_s26 = smov [#allocation13]   ;;  %s2845_s12 = smov [#allocation16]  }
  0xc6   : > { %s385_s1 = sshll.u32 %s2844_s26, 4  ;;  %s409_s23 = sshll.u32 %s2845_s12, 4  ;;  %s386_s1 = int_to_ptr.vmem [resolvable:$true] %s385_s1  ;;  %s410_s23 = int_to_ptr.vmem [resolvable:$true] %s409_s23 }
  0xc7   : > { %s2617_s13 = scalar_lea.hbm %s3418_s6, 16 }
  0xc8   : > { %p2618_p1 = scmp.ne.s32.totalorder %s3418_s6, %s2617_s13  ;;  %p2624_p12 = scmp.lt.u32.totalorder %s2617_s13, %s3418_s6 }
  0xca   : > { %p2620_p3 = pnand %p2618_p1, %p2978_p8 }
  0xcc   : > { %p2621_p11 = pneg %p2620_p3 }
  0xce   : > { %p2626_p13 = pnand %p2624_p12, %p2621_p11 }
  0xd0   : > { %2629 = shalt.err (!%p2626_p13)
}
  0xd1   : > { %s2630_s29 = scalar_lea.vmem %s386_s1, 16  ;;  %s2637_s20 = scalar_lea.vmem %s386_s1, 32 }
  0xd2   : > { %p2631_p0 = scmp.ne.s32.totalorder %s386_s1, %s2630_s29  ;;  %p2638_p7 = scmp.lt.s32.totalorder %s386_s1, %s386_s1 }
  0xd3   : > { %p2639_p9 = scmp.lt.s32.totalorder %s2637_s20, %s2630_s29 }
  0xd4   : > { %p2633_p2 = pnand %p2631_p0, %p2978_p8 }
  0xd5   : > { %p2640_p5 = por %p2639_p9, %p2638_p7 }
  0xd6   : > { %p2634_p4 = pneg %p2633_p2 }
  0xd8   : > { %p2641_p10 = pnand %p2640_p5, %p2634_p4 }
  0xda   : > { %2644 = shalt.err (!%p2641_p10)
}
  0xdb   : > { %2242 = dma.hbm_to_vmem [thread:$0]  (!%p2962_p6), %s3418_s6, 16, %s386_s1, [#allocation12]  }
  0xdc   : > { %s2645_s13 = scalar_lea.hbm %s3420_s8, 16 }
  0xdd   : > { %p2646_p1 = scmp.ne.s32.totalorder %s3420_s8, %s2645_s13  ;;  %p2652_p12 = scmp.lt.u32.totalorder %s2645_s13, %s3420_s8 }
  0xdf   : > { %p2648_p3 = pnand %p2646_p1, %p2978_p8 }
  0xe1   : > { %p2649_p11 = pneg %p2648_p3 }
  0xe3   : > { %p2654_p13 = pnand %p2652_p12, %p2649_p11 }
  0xe5   : > { %2657 = shalt.err (!%p2654_p13)
}
  0xe6   : > { %s2658_s29 = scalar_lea.vmem %s410_s23, 16  ;;  %s2665_s1 = scalar_lea.vmem %s410_s23, 32 }
  0xe7   : > { %p2659_p0 = scmp.ne.s32.totalorder %s410_s23, %s2658_s29  ;;  %p2666_p7 = scmp.lt.s32.totalorder %s410_s23, %s410_s23 }
  0xe8   : > { %p2667_p9 = scmp.lt.s32.totalorder %s2665_s1, %s2658_s29 }
  0xe9   : > { %p2661_p2 = pnand %p2659_p0, %p2978_p8 }
  0xea   : > { %p2668_p5 = por %p2667_p9, %p2666_p7 }
  0xeb   : > { %p2662_p4 = pneg %p2661_p2 }
  0xed   : > { %p2669_p10 = pnand %p2668_p5, %p2662_p4 }
  0xef   : > { %2672 = shalt.err (!%p2669_p10)
}
  0xf0   : > { %2248 = dma.hbm_to_vmem [thread:$0]  (!%p2962_p6), %s3420_s8, 16, %s410_s23, [#allocation15]  }
  0xf1   : > { %s2846_s12 = smov [#allocation19]   ;;  %s2673_s24 = scalar_lea.hbm %s3422_s10, 16 }
  0xf2   : > { %s433_s27 = sshll.u32 %s2846_s12, 4  ;;  %p2674_p1 = scmp.ne.s32.totalorder %s3422_s10, %s2673_s24  ;;  %s434_s27 = int_to_ptr.vmem [resolvable:$true] %s433_s27 }
  0xf3   : > { %p2680_p12 = scmp.lt.u32.totalorder %s2673_s24, %s3422_s10 }
  0xf4   : > { %p2676_p3 = pnand %p2674_p1, %p2978_p8 }
  0xf6   : > { %p2677_p11 = pneg %p2676_p3 }
  0xf8   : > { %p2682_p13 = pnand %p2680_p12, %p2677_p11 }
  0xfa   : > { %2685 = shalt.err (!%p2682_p13)
}
  0xfb   : > { %s2686_s23 = scalar_lea.vmem %s434_s27, 16  ;;  %s2693_s1 = scalar_lea.vmem %s434_s27, 32 }
  0xfc   : > { %p2687_p0 = scmp.ne.s32.totalorder %s434_s27, %s2686_s23  ;;  %p2694_p7 = scmp.lt.s32.totalorder %s434_s27, %s434_s27 }
  0xfd   : > { %p2695_p9 = scmp.lt.s32.totalorder %s2693_s1, %s2686_s23 }
  0xfe   : > { %p2689_p2 = pnand %p2687_p0, %p2978_p8 }
  0xff   : > { %p2696_p5 = por %p2695_p9, %p2694_p7 }
 0x100   : > { %p2690_p4 = pneg %p2689_p2 }
 0x102   : > { %p2697_p10 = pnand %p2696_p5, %p2690_p4 }
 0x104   : > { %2700 = shalt.err (!%p2697_p10)
}
 0x105   : > { %s3453_s11 = sld [smem:[#allocation29_spill]]  ;;  %s1871_s12 = sadd.s32 4294967294, %s2833_s22  }
 0x106   : > { %2254 = dma.hbm_to_vmem [thread:$0]  (!%p2962_p6), %s3422_s10, 16, %s434_s27, [#allocation18]  }
 0x107   : > { %s44_s30 = sadd.s32 1, %s2829_s21  ;;  %s51_s28 = sadd.s32 1, %s2821_s19 }
 0x108   : > { %p46_p8 = scmp.ge.s32.totalorder %s44_s30, 2  ;;  %p58_p1 = scmp.ne.s32.totalorder %s2821_s19, %s2817_s18 }
 0x109   : > { %p59_p3 = scmp.eq.s32.totalorder %s2833_s22, 0  ;;  %p64_p12 = scmp.ne.s32.totalorder %s2817_s18, %s2813_s17 }
 0x10a   : > { %s3479_s30 = smov (%p46_p8, %s44_s30), 0  ;;  %s3455_s24 = sadd.s32 4294967295, %s2833_s22  }
 0x10b   : > { %p3187_p11 = por %p59_p3, %p58_p1  ;;  %s48_s27 = ssub.s32 %s2829_s21, %s3479_s30 }
 0x10c   : > { %p300_p6 = scmp.eq.s32.totalorder %s3455_s24, 1  ;;  %p49_p13 = scmp.eq.s32.totalorder %s48_s27, 0 }
 0x10d   : > { %p3456_p0 = scmp.ne.s32.totalorder %s3453_s11, 0  ;;  %p306_p7 = scmp.eq.s32.totalorder %s1871_s12, 1 }
 0x10e   : > { %p3203_p4 = por %p300_p6, %p58_p1  ;;  %p2273_p5 = scmp.lt.s32.totalorder %s2833_s22, 2 }
 0x10f   : > { %p3199_p2 = por %p3456_p0, %p64_p12  ;;  %p3210_p9 = por %p306_p7, %p64_p12 }
 0x110   : > { %s3458_s25 = scalar_select %p3203_p4, 1, 0 }
 0x111   : > { %s3208_s14 = scalar_select %p49_p13, %s2821_s19, %s51_s28  }
 0x112   : > { %s3459_s29 = scalar_select %p3210_p9, 1, 0 }
 0x113   : > { %s444_s23 = sand.u32 1, %s2821_s19   ;;  %s1994_s1 = sshll.u32 %s2829_s21, 7 }
 0x114   : > { %s1884_s20 = sshll.u32 %s444_s23, 3  ;;  %s3460_s27 = sld [smem:[#allocation31_spill]] }
 0x115   : > { %s448_s12 = scalar_lea.vmem [#allocation2], %s1884_s20  ;;  %p3224_p10 = pnand %p2273_p5, %p3187_p11 }
 0x116   : > { %s455_s28 = sshll.u32 %s448_s12, 4  ;;  %s3230_s2 = scalar_lea.sflag [#allocation3], %s444_s23  ;;  %s3228_s28 = int_to_ptr.vmem [resolvable:$true] %s455_s28 }
 0x117   : > { %p2703_p1 = pneg %p3224_p10 }
 0x11a   : > { %s3220_s24 = scalar_lea.hbm %s3460_s27, %s1994_s1  ;;  %s2706_s20 = scalar_lea.hbm %s3460_s27, 256 }
 0x11b   : > { %s2701_s26 = scalar_lea.hbm %s3220_s24, 128  ;;  %p2707_p11 = scmp.lt.u32.totalorder %s3220_s24, %s3460_s27 }
 0x11c   : > { %p2702_p8 = scmp.ne.s32.totalorder %s3220_s24, %s2701_s26  ;;  %p2708_p6 = scmp.lt.u32.totalorder %s2706_s20, %s2701_s26 }
 0x11d   : > { %p2710_p0 = scmp.lt.u32.totalorder %s2701_s26, %s3220_s24 }
 0x11e   : > { %p2704_p3 = pnand %p2703_p1, %p2702_p8  ;;  %p2709_p13 = por %p2708_p6, %p2707_p11 }
 0x120   : > { %p2705_p12 = pneg %p2704_p3  ;;  %p2711_p7 = por %p2710_p0, %p2709_p13 }
 0x122   : > { %p2712_p5 = pnand %p2711_p7, %p2705_p12 }
 0x124   : > { %2715 = shalt.err (!%p2712_p5)
}
 0x125   : > { %s2716_s23 = scalar_lea.vmem %s3228_s28, 128  ;;  %s2847_s1 = smov [#allocation2]  }
 0x126   : > { %p2717_p8 = scmp.ne.s32.totalorder %s3228_s28, %s2716_s23  ;;  %s2721_s13 = sshll.u32 %s2847_s1, 4  ;;  %s2722_s13 = int_to_ptr.vmem [resolvable:$false] %s2721_s13 }
 0x127   : > { %s2723_s11 = scalar_lea.vmem %s2722_s13, 256  ;;  %p2724_p4 = scmp.lt.s32.totalorder %s3228_s28, %s2722_s13 }
 0x128   : > { %p2719_p3 = pnand %p2717_p8, %p2703_p1  ;;  %p2725_p11 = scmp.lt.s32.totalorder %s2723_s11, %s2716_s23 }
 0x12a   : > { %p2720_p9 = pneg %p2719_p3  ;;  %p2726_p6 = por %p2725_p11, %p2724_p4 }
 0x12c   : > { %p2727_p13 = pnand %p2726_p6, %p2720_p9 }
 0x12e   : > { %2730 = shalt.err (!%p2727_p13)
}
 0x12f   : > { %s3462_s26 = smov 4   ;;  %s3463_s20 = sld [smem:[#allocation30_spill]] }
 0x130   : > { %2258 = dma.hbm_to_vmem [thread:$0]  (!%p3224_p10), %s3220_s24, 128, %s3228_s28, %s3230_s2, %s3451_s0, %s3451_s0, %s3462_s26  }
 0x135   : > { %p3464_p1 = scmp.ne.s32.totalorder %s3463_s20, 0 }
 0x136   : > { %s3264_s12 = sand.u32 (!%p3464_p1), 1, %s2817_s18  }
 0x137   : > { %467 = sbr.rel (%p3464_p1) target bundleno = 1275 (0x4fb), region = 64  ;;  %s1888_s23 = sshll.u32 (!%p3464_p1), %s3264_s12, 3 }
 0x138   : > { %s470_s1 = scalar_lea.sflag (!%p3464_p1), [#allocation3], %s3264_s12  ;;  %s473_s15 = scalar_lea.vmem (!%p3464_p1), [#allocation2], %s1888_s23 }
 0x13e   : > { %2784 = dma.done.wait (%p3199_p2), %s470_s1, 128  }
 0x13f   : > { %2786 = vsyncadd (%p3199_p2), %s470_s1, 4294967168  ;;  %s3465_s2 = sld [smem:[#allocation29_spill]] }
 0x145   : > { %p3466_p4 = scmp.ne.s32.totalorder %s3465_s2, 0 }
 0x147   : > { %2788 = dma.done.wait (%p3466_p4), [#allocation6], 144  }
 0x148   : > { %2790 = vsyncadd (%p3466_p4), [#allocation6], 4294967152 }
 0x149   : > { %2792 = dma.done.wait (%p3466_p4), [#allocation9], 3088  }
 0x14a   : > { %2794 = vsyncadd (%p3466_p4), [#allocation9], 4294964208 }
 0x14b   : > { %2796 = dma.done.wait (%p3466_p4), [#allocation12], 48  }
 0x14c   : > { %2798 = vsyncadd (%p3466_p4), [#allocation12], 4294967248 }
 0x14d   : > { %2800 = dma.done.wait (%p3466_p4), [#allocation15], 3088  }
 0x14e   : > { %2802 = vsyncadd (%p3466_p4), [#allocation15], 4294964208 }
 0x14f   : > { %2804 = dma.done.wait (%p3466_p4), [#allocation18], 3088  }
 0x150   : > { %2806 = vsyncadd (%p3466_p4), [#allocation18], 4294964208  ;;  %v2848_v0 = vmov 0.0   ;;  %vm2849_vm0 = vmmov 0   ;;  %vm578_vm1 = vcmask 1043456   ;;  %vm574_vm2 = vcmask 64512  }
 0x151   : > { %2100 = vmatprep.subr.bf16.mxu1 %v2848_v0  ;;  %2094 = vmatprep.subr.bf16.mxu0 %v2848_v0  ;;  %v560_v1 = vld [vmem:[#allocation5] sm:$0xf]  ;;  %v561_v2 = vld [vmem:[#allocation5 + $0x4] sm:$0xf]  ;;  %v2348_v5 = vld [vmem:[%s473_s15] sm:$0xff]   ;;  %s2850_s0 = smov 124   ;;  %v679_v35 = vlaneseq }
 0x152   : > { %2102 = vmatprep.mubr.msk.bf16.mxu1 %vm2849_vm0, %v2848_v0  ;;  %2096 = vmatprep.mubr.msk.bf16.mxu0 %vm2849_vm0, %v2848_v0  ;;  %v626_v3 = vsel %vm578_vm1, %v560_v1, 0  ;;  %v580_v4 = vsel %vm578_vm1, %v561_v2, 0  ;;  %v2349_v6 = vld [vmem:[#allocation8 + $0x80] sm:$0xff]   ;;  %v568_v7 = vshrl.u32 %v2348_v5, 16  ;;  %v570_v8 = vshll.u32 %v2348_v5, 16  ;;  %v2350_v11 = vld [vmem:[#allocation8 + $0x88] sm:$0xff]  }
 0x153   : > { %2101 = vmatpush3.bf16.msra.mxu1 %v626_v3  ;;  %2095 = vmatpush3.bf16.msra.mxu0 %v580_v4  ;;  %v2351_v9 = vld [vmem:[#allocation8 + $0x40] sm:$0xff]   ;;  %v2354_v14 = vld [vmem:[#allocation8 + $0x48] sm:$0xff]   ;;  %v2353_v15 = vld [vmem:[#allocation8 + $0x90] sm:$0xff]   ;;  %v3313_v36 = vshrl.u32 %v679_v35, 7  ;;  %vm1004_vm5 = vcmask 1041408   ;;  %vm1000_vm7 = vcmask 31744  }
 0x154   : > { %2106 = vmatprep.subr.bf16.mxu1 %v2848_v0  ;;  %v572_v10 = vrot.slane %v570_v8, 1  ;;  %1999 = vmatprep.subr.bf16.mxu0 %v2351_v9  ;;  %v2352_v12 = vld [vmem:[#allocation8] sm:$0xff]   ;;  %v2355_v16 = vld [vmem:[#allocation8 + $0x8] sm:$0xff]   ;;  %v2357_v17 = vld [vmem:[#allocation8 + $0x50] sm:$0xff]   ;;  %vm1671_vm10 = vcmask 1045504   ;;  %s3467_s16 = sld [smem:[#allocation28_spill]] }
 0x155   : > { %v2356_v18 = vld [vmem:[#allocation8 + $0x98] sm:$0xff]   ;;  %v2358_v19 = vld [vmem:[#allocation8 + $0x10] sm:$0xff]   ;;  %v2359_v20 = vld [vmem:[#allocation8 + $0xa0] sm:$0xff]   ;;  %v3316_v38 = vadd.s32 8, %v3313_v36  ;;  %v683_v44 = vadd.s32 4294967293, %v3313_v36  ;;  %v1055_v35 = vadd.s32 4294967294, %v3313_v36 }
 0x156   : > { %2103 = vmatmul.mubr.msk.bf16.vlgmr.msra.gmra.mrb[0].mxu1 %vm574_vm2, %v2348_v5  ;;  %v573_v13 = vor.u32 %v572_v10, %v568_v7  ;;  %v2360_v21 = vld [vmem:[#allocation8 + $0x58] sm:$0xff]   ;;  %v2362_v23 = vld [vmem:[#allocation8 + $0xa8] sm:$0xff]   ;;  %v2363_v24 = vld [vmem:[#allocation8 + $0x60] sm:$0xff]   ;;  %s551_s28 = scalar_lea.vmem [#allocation20], %s1888_s23  ;;  %s3468_s20 = sld [smem:[#allocation35_spill]] }
 0x157   : > { %2107 = vmatpush3.bf16.msra.mxu1 %v2349_v6  ;;  %2122 = vmatprep.mubr.msk.bf16.mxu1 %vm2849_vm0, %v2848_v0  ;;  %v2361_v22 = vld [vmem:[#allocation8 + $0x18] sm:$0xff]   ;;  %v2364_v25 = vld [vmem:[#allocation8 + $0x20] sm:$0xff]   ;;  %v2365_v26 = vld [vmem:[#allocation8 + $0xb0] sm:$0xff]   ;;  %v684_v45 = vadd.s32 4294967293, %v3316_v38  ;;  %vm685_vm3 = vcmp.ge.s32.totalorder %v683_v44, 0  ;;  %vm1057_vm8 = vcmp.ge.s32.totalorder %v1055_v35, 0 }
 0x158   : > { %2108 = vmatprep.subr.bf16.mxu1 %v2848_v0  ;;  %2097 = vmatmul.mubr.msk.bf16.vlgmr.msra.gmra.mrb[0].mxu0 %vm574_vm2, %v573_v13  ;;  %v2366_v27 = vld [vmem:[#allocation8 + $0x68] sm:$0xff]   ;;  %v2368_v29 = vld [vmem:[#allocation8 + $0xb8] sm:$0xff]   ;;  %v2369_v30 = vld [vmem:[#allocation8 + $0x70] sm:$0xff]   ;;  %s1694_s13 = sshll.u32 %s551_s28, 4  ;;  %s1680_s2 = scalar_lea.sflag [#allocation4], %s3264_s12  ;;  %s3365_s13 = int_to_ptr.vmem [resolvable:$true] %s1694_s13 }
 0x159   : > { %998 = vrot.lane.b32.xlu0 %v573_v13, %s2850_s0  ;;  %2000 = vmatpush3.bf16.msra.mxu0 %v2352_v12  ;;  %v2367_v28 = vld [vmem:[#allocation8 + $0x28] sm:$0xff]   ;;  %v2370_v31 = vld [vmem:[#allocation8 + $0x30] sm:$0xff]   ;;  %v2371_v32 = vld [vmem:[#allocation8 + $0x78] sm:$0xff]   ;;  %vm688_vm4 = vcmp.lt.s32.totalorder %v684_v45, 8  ;;  %s2731_s0 = scalar_lea.vmem %s3365_s13, 128  ;;  %p3470_p9 = scmp.ne.s32.totalorder %s3458_s25, 0 }
 0x15a   : > { %2001 = vmatprep.subr.bf16.mxu0 %v2354_v14  ;;  %v2372_v33 = vld [vmem:[#allocation8 + $0x38] sm:$0xff]   ;;  %v2374_v34 = vld [vmem:[#allocation14 + $0x40] sm:$0xff]   ;;  %v990_v56 = vld [vmem:[#allocation11] sm:$0x3]  ;;  %s1991_s24 = sshll.u32 %s3467_s16, 7  ;;  %p2732_p2 = scmp.ne.s32.totalorder %s3365_s13, %s2731_s0 }
 0x15b   : > { %2109 = vmatpush3.bf16.msra.mxu1 %v2350_v11  ;;  %v1903_v43 = vld [vmem:[#allocation7] ss:$0 sm:$0xff]  ;;  %v1006_v59 = vsel %vm1004_vm5, %v990_v56, 0  ;;  %vm1929_vm6 = vmpackc.low %vm688_vm4, %vm685_vm3  ;;  %v2376_v1 = vld [vmem:[#allocation14] sm:$0xff]   ;;  %s2851_s23 = smov [#allocation20]  }
 0x15c   : > { %2110 = vmatprep.subr.bf16.mxu1 %v2848_v0  ;;  %v2377_v2 = vld [vmem:[#allocation14 + $0x48] sm:$0xff]   ;;  %v2373_v5 = vld [vmem:[#allocation14 + $0x80] sm:$0xff]   ;;  %v2378_v7 = vld [vmem:[#allocation14 + $0x90] sm:$0xff]   ;;  %s3469_s1 = smov %s3468_s20  ;;  %s3363_s15 = scalar_lea.hbm %s3468_s20, %s1991_s24 }
 0x15d   : > { %2002 = vmatpush3.bf16.msra.mxu0 %v2355_v16  ;;  %v2379_v3 = vld [vmem:[#allocation14 + $0x8] sm:$0xff]   ;;  %v2380_v8 = vld [vmem:[#allocation14 + $0x50] sm:$0xff]   ;;  %v2381_v9 = vld [vmem:[#allocation14 + $0x98] sm:$0xff]   ;;  %p2733_p10 = pnand %p2732_p2, %p3470_p9  ;;  %s2735_s16 = sshll.u32 %s2851_s23, 4  ;;  %s2736_s16 = int_to_ptr.vmem [resolvable:$false] %s2735_s16 }
 0x15e   : > { %2003 = vmatprep.subr.bf16.mxu0 %v2357_v17  ;;  %v2375_v6 = vld [vmem:[#allocation14 + $0x88] sm:$0xff]   ;;  %v2382_v10 = vld [vmem:[#allocation14 + $0x10] sm:$0xff]   ;;  %v2383_v11 = vld [vmem:[#allocation14 + $0x58] sm:$0xff]   ;;  %s2737_s3 = scalar_lea.vmem %s2736_s16, 256  ;;  %p2738_p0 = scmp.lt.s32.totalorder %s3365_s13, %s2736_s16 }
 0x15f   : > { %2111 = vmatpush3.bf16.msra.mxu1 %v2353_v15  ;;  %v2384_v12 = vld [vmem:[#allocation14 + $0xa0] sm:$0xff]   ;;  %v2385_v13 = vld [vmem:[#allocation14 + $0x18] sm:$0xff]   ;;  %v2387_v15 = vld [vmem:[#allocation14 + $0xa8] sm:$0xff]   ;;  %p2734_p12 = pneg %p2733_p10  ;;  %p2739_p7 = scmp.lt.s32.totalorder %s2737_s3, %s2731_s0 }
 0x160   : > { %2112 = vmatprep.subr.bf16.mxu1 %v2848_v0  ;;  %v2386_v14 = vld [vmem:[#allocation14 + $0x60] sm:$0xff]   ;;  %v2389_v17 = vld [vmem:[#allocation14 + $0x68] sm:$0xff]  }
 0x161   : > { %2004 = vmatpush3.bf16.msra.mxu0 %v2358_v19  ;;  %v2388_v16 = vld [vmem:[#allocation14 + $0x20] sm:$0xff]   ;;  %v2391_v19 = vld [vmem:[#allocation14 + $0x28] sm:$0xff]   ;;  %p2740_p5 = por %p2739_p7, %p2738_p0 }
 0x162   : > { %2005 = vmatprep.subr.bf16.mxu0 %v2360_v21  ;;  %v2393_v21 = vld [vmem:[#allocation14 + $0xb8] sm:$0xff]   ;;  %v2397_v56 = vld [vmem:[#allocation17 + $0x80] sm:$0xff]  }
 0x163   : > { %2113 = vmatpush3.bf16.msra.mxu1 %v2356_v18  ;;  %v2390_v18 = vld [vmem:[#allocation14 + $0xb0] sm:$0xff]   ;;  %p2741_p8 = pnand %p2740_p5, %p2734_p12 }
 0x164   : > { %2114 = vmatprep.subr.bf16.mxu1 %v2848_v0 }
 0x165   : > { %2006 = vmatpush3.bf16.msra.mxu0 %v2361_v22  ;;  %v2394_v22 = vld [vmem:[#allocation14 + $0x30] sm:$0xff]  }
 0x166   : > { %2007 = vmatprep.subr.bf16.mxu0 %v2363_v24  ;;  %v2396_v24 = vld [vmem:[#allocation14 + $0x38] sm:$0xff]  }
 0x167   : > { %2115 = vmatpush3.bf16.msra.mxu1 %v2359_v20  ;;  %v2392_v20 = vld [vmem:[#allocation14 + $0x70] sm:$0xff]  }
 0x168   : > { %2116 = vmatprep.subr.bf16.mxu1 %v2848_v0 }
 0x169   : > { %2008 = vmatpush3.bf16.msra.mxu0 %v2364_v25  ;;  %v2398_v25 = vld [vmem:[#allocation17 + $0x40] sm:$0xff]  }
 0x16a   : > { %2009 = vmatprep.subr.bf16.mxu0 %v2366_v27  ;;  %v1904_v27 = vld [vmem:[#allocation10] ss:$0 sm:$0xff] }
 0x16b   : > { %2117 = vmatpush3.bf16.msra.mxu1 %v2362_v23  ;;  %v2395_v23 = vld [vmem:[#allocation14 + $0x78] sm:$0xff]  }
 0x16c   : > { %2118 = vmatprep.subr.bf16.mxu1 %v2848_v0 }
 0x16d   : > { %2010 = vmatpush3.bf16.msra.mxu0 %v2367_v28 }
 0x16e   : > { %2011 = vmatprep.subr.bf16.mxu0 %v2369_v30 }
 0x16f   : > { %2119 = vmatpush3.bf16.msra.mxu1 %v2365_v26 }
 0x170   : > { %2120 = vmatprep.subr.bf16.mxu1 %v2848_v0 }
 0x171   : > { %2012 = vmatpush3.bf16.msra.mxu0 %v2370_v31 }
 0x172   : > { %2013 = vmatprep.subr.bf16.mxu0 %v2371_v32  ;;  %v1932_v32 = vld [vmem:[#allocation13] ss:$0 sm:$0xff] }
 0x173   : > { %2121 = vmatpush3.bf16.msra.mxu1 %v2368_v29 }
 0x174   : > { %2126 = vmatprep.subr.bf16.mxu1 %v2848_v0 }
 0x175   : > { %2014 = vmatpush3.bf16.msra.mxu0 %v2372_v33 }
 0x176   : > { %2032 = vmatprep.subr.bf16.mxu0 %v2374_v34 }
 0x1cb   : > { %v999_v4 = vpop.permute.xlu0 %998 }
 0x229   : > { %v662_v37 = vpop.f32.mrb[0].mxu1 }
 0x22a   : > { %v2104_v39 = vpop.f32.mrb[1].mxu1 }
 0x22b   : > { %v665_v40 = vpop.f32.mrb[2].mxu1  ;;  %v616_v42 = vpop.f32.mrb[0].mxu0 }
 0x22c   : > { %v2105_v41 = vpop.f32.mrb[3].mxu1  ;;  %v663_v46 = vadd.f32 %v662_v37, %v616_v42  ;;  %v2098_v47 = vpop.f32.mrb[1].mxu0 }
 0x22d   : > { %v619_v48 = vpop.f32.mrb[2].mxu0  ;;  %v1056_v41 = vadd.s32 4294967294, %v3316_v38 }
 0x22e   : > { %v676_v49 = vadd.f32 %v1903_v43, %v663_v46  ;;  %v666_v50 = vadd.f32 %v665_v40, %v619_v48  ;;  %v2099_v51 = vpop.f32.mrb[3].mxu0 }
 0x22f   : > { %vm1060_vm9 = vcmp.lt.s32.totalorder %v1056_v41, 8 }
 0x230   : > { %v677_v52 = vadd.f32 %v1903_v43, %v666_v50  ;;  %v695_v53 = vsel %vm685_vm3, %v676_v49, 0.0  ;;  %vm1959_vm11 = vmpackc.low %vm1060_vm9, %vm1057_vm8 }
 0x232   : > { %v696_v54 = vsel %vm688_vm4, %v677_v52, 0.0  ;;  %v1930_v55 = vpack.c.bf16 %v677_v52, %v676_v49 }
 0x233   : > { %v697_v57 = vpack.c.bf16 %v696_v54, %v695_v53 }
 0x235   : > { %v707_v58 = vrot.slane %v697_v57, 1  ;;  %v701_v60 = vshll.u32 %v697_v57, 16  ;;  %v699_v61 = vshrl.u32 %v697_v57, 16 }
 0x237   : > { %2123 = vmatmul.mubr.bf16.vlgmr.msra.gmra.mrb[4].mxu1 %v707_v58  ;;  %v703_v62 = vrot.slane %v701_v60, 1 }
 0x238   : > { %2127 = vmatpush3.bf16.msra.mxu1 %v1006_v59  ;;  %2128 = vmatprep.mubr.msk.bf16.mxu1 %vm2849_vm0, %v2848_v0 }
 0x239   : > { %v704_v63 = vor.u32 %v703_v62, %v699_v61  ;;  %2132 = vmatprep.subr.bf16.mxu1 %v2848_v0  ;;  %v2399_v62 = vld [vmem:[#allocation17 + $0x88] sm:$0xff]  }
 0x23b   : > { %940 = vmatprep.mubr.bf16.mxu0 %v704_v63 }
 0x23c   : > { %1931 = vmatmul.mubr.msk.bf16.vlgmr.msra.gmra.mrb[4].mxu0 %vm1929_vm6, %v1930_v55 }
 0x23d   : > { %2033 = vmatpush3.bf16.msra.mxu0 %v2376_v1  ;;  %v2400_v1 = vld [vmem:[#allocation17] sm:$0xff]  }
 0x23e   : > { %2034 = vmatprep.subr.bf16.mxu0 %v2377_v2  ;;  %v2401_v2 = vld [vmem:[#allocation17 + $0x48] sm:$0xff]  }
 0x241   : > { %2035 = vmatpush3.bf16.msra.mxu0 %v2379_v3  ;;  %v2402_v3 = vld [vmem:[#allocation17 + $0x90] sm:$0xff]  }
 0x242   : > { %2036 = vmatprep.subr.bf16.mxu0 %v2380_v8  ;;  %v2407_v8 = vld [vmem:[#allocation17 + $0x58] sm:$0xff]  }
 0x243   : > { %2129 = vmatmul.mubr.msk.bf16.vlgmr.msra.gmra.mrb[4].mxu1 %vm1000_vm7, %v999_v4  ;;  %v2403_v4 = vld [vmem:[#allocation17 + $0x8] sm:$0xff]  }
 0x244   : > { %2133 = vmatpush3.bf16.msra.mxu1 %v2373_v5  ;;  %2148 = vmatprep.mubr.msk.bf16.mxu1 %vm2849_vm0, %v2848_v0  ;;  %v2404_v5 = vld [vmem:[#allocation17 + $0x50] sm:$0xff]  }
 0x245   : > { %2134 = vmatprep.subr.bf16.mxu1 %v2848_v0  ;;  %2037 = vmatpush3.bf16.msra.mxu0 %v2382_v10  ;;  %v2409_v10 = vld [vmem:[#allocation17 + $0x18] sm:$0xff]  }
 0x246   : > { %2038 = vmatprep.subr.bf16.mxu0 %v2383_v11  ;;  %v2410_v11 = vld [vmem:[#allocation17 + $0x60] sm:$0xff]  }
 0x248   : > { %2135 = vmatpush3.bf16.msra.mxu1 %v2375_v6  ;;  %v2405_v6 = vld [vmem:[#allocation17 + $0x98] sm:$0xff]  }
 0x249   : > { %2136 = vmatprep.subr.bf16.mxu1 %v2848_v0  ;;  %2039 = vmatpush3.bf16.msra.mxu0 %v2385_v13  ;;  %v2412_v13 = vld [vmem:[#allocation17 + $0x20] sm:$0xff]  }
 0x24a   : > { %2040 = vmatprep.subr.bf16.mxu0 %v2386_v14  ;;  %v2413_v14 = vld [vmem:[#allocation17 + $0x68] sm:$0xff]  }
 0x24c   : > { %2137 = vmatpush3.bf16.msra.mxu1 %v2378_v7  ;;  %v2406_v7 = vld [vmem:[#allocation17 + $0x10] sm:$0xff]  }
 0x24d   : > { %2138 = vmatprep.subr.bf16.mxu1 %v2848_v0  ;;  %2041 = vmatpush3.bf16.msra.mxu0 %v2388_v16  ;;  %v2415_v16 = vld [vmem:[#allocation17 + $0x28] sm:$0xff]  }
 0x24e   : > { %2042 = vmatprep.subr.bf16.mxu0 %v2389_v17  ;;  %v2416_v17 = vld [vmem:[#allocation17 + $0x70] sm:$0xff]  }
 0x250   : > { %2139 = vmatpush3.bf16.msra.mxu1 %v2381_v9  ;;  %v2408_v9 = vld [vmem:[#allocation17 + $0xa0] sm:$0xff]  }
 0x251   : > { %2140 = vmatprep.subr.bf16.mxu1 %v2848_v0  ;;  %2043 = vmatpush3.bf16.msra.mxu0 %v2391_v19  ;;  %v2418_v19 = vld [vmem:[#allocation17 + $0x30] sm:$0xff]  }
 0x252   : > { %2044 = vmatprep.subr.bf16.mxu0 %v2392_v20  ;;  %v2419_v20 = vld [vmem:[#allocation17 + $0x78] sm:$0xff]  }
 0x254   : > { %2141 = vmatpush3.bf16.msra.mxu1 %v2384_v12  ;;  %v2411_v12 = vld [vmem:[#allocation17 + $0xa8] sm:$0xff]  }
 0x255   : > { %2142 = vmatprep.subr.bf16.mxu1 %v2848_v0  ;;  %2045 = vmatpush3.bf16.msra.mxu0 %v2394_v22 }
 0x256   : > { %2046 = vmatprep.subr.bf16.mxu0 %v2395_v23 }
 0x258   : > { %2143 = vmatpush3.bf16.msra.mxu1 %v2387_v15  ;;  %v2414_v15 = vld [vmem:[#allocation17 + $0xb0] sm:$0xff]  }
 0x259   : > { %2144 = vmatprep.subr.bf16.mxu1 %v2848_v0  ;;  %2047 = vmatpush3.bf16.msra.mxu0 %v2396_v24 }
 0x25a   : > { %2063 = vmatprep.subr.bf16.mxu0 %v2398_v25 }
 0x25c   : > { %2145 = vmatpush3.bf16.msra.mxu1 %v2390_v18  ;;  %v2417_v18 = vld [vmem:[#allocation17 + $0xb8] sm:$0xff]  }
 0x25d   : > { %2146 = vmatprep.subr.bf16.mxu1 %v2848_v0 }
 0x260   : > { %2147 = vmatpush3.bf16.msra.mxu1 %v2393_v21  ;;  %v2420_v21 = vld [vmem:[#allocation17 + $0x38] sm:$0xff]  }
 0x261   : > { %2152 = vmatprep.subr.bf16.mxu1 %v2848_v0 }
 0x30f   : > { %v2015_v26 = vpop.f32.mrb[4].mxu0 }
 0x310   : > { %v2016_v28 = vpop.f32.mrb[5].mxu0 }
 0x311   : > { %v2017_v29 = vadd.f32 %v2016_v28, %v2015_v26  ;;  %v2018_v30 = vpop.f32.mrb[6].mxu0 }
 0x312   : > { %v2019_v31 = vpop.f32.mrb[7].mxu0 }
 0x313   : > { %v943_v33 = vadd.f32 %v2017_v29, %v1904_v27  ;;  %v2020_v34 = vadd.f32 %v2019_v31, %v2018_v30 }
 0x315   : > { %v946_v37 = vadd.f32 %v2020_v34, %v1904_v27  ;;  %v2172_v39 = vadd.f32 %v1932_v32, %v943_v33  ;;  %v1934_v27 = vld [vmem:[#allocation16] ss:$0 sm:$0xff] }
 0x316   : > { %v1042_v40 = vpop.f32.mrb[4].mxu1 }
 0x317   : > { %v2173_v42 = vadd.f32 %v2172_v39, %v1042_v40  ;;  %v2130_v43 = vpop.f32.mrb[5].mxu1  ;;  %v2174_v44 = vadd.f32 %v1932_v32, %v946_v37  ;;  %v1365_v32 = vadd.s32 4294967295, %v3316_v38 }
 0x318   : > { %v1045_v45 = vpop.f32.mrb[6].mxu1 }
 0x319   : > { %v1051_v46 = vmax.f32 %v2173_v42, 0.0  ;;  %v2175_v47 = vadd.f32 %v2174_v44, %v1045_v45  ;;  %v2131_v48 = vpop.f32.mrb[7].mxu1  ;;  %vm1369_vm13 = vcmp.lt.s32.totalorder %v1365_v32, 8 }
 0x31b   : > { %v1067_v49 = vsel %vm1057_vm8, %v1051_v46, 0.0  ;;  %v1052_v50 = vmax.f32 %v2175_v47, 0.0 }
 0x31c   : > { %v1672_v53 = vrot.slane %v1067_v49, 2 }
 0x31d   : > { %v1068_v51 = vsel %vm1060_vm9, %v1052_v50, 0.0  ;;  %v1960_v52 = vpack.c.bf16 %v1052_v50, %v1051_v46 }
 0x31e   : > { %v1069_v54 = vpack.c.bf16 %v1068_v51, %v1067_v49  ;;  %v1673_v55 = vrot.slane %v1068_v51, 2 }
 0x320   : > { %v1079_v57 = vrot.slane %v1069_v54, 1  ;;  %v1073_v58 = vshll.u32 %v1069_v54, 16  ;;  %v3341_v59 = vsel %vm1671_vm10, %v1672_v53, %v1673_v55  ;;  %v1071_v60 = vshrl.u32 %v1069_v54, 16 }
 0x322   : > { %2149 = vmatmul.mubr.bf16.vlgmr.msra.gmra.mrb[8].mxu1 %v1079_v57  ;;  %v1075_v61 = vrot.slane %v1073_v58, 1 }
 0x323   : > { %2153 = vmatpush3.bf16.msra.mxu1 %v2397_v56  ;;  %2168 = vmatprep.mubr.msk.bf16.mxu1 %vm2849_vm0, %v2848_v0 }
 0x324   : > { %v1076_v63 = vor.u32 %v1075_v61, %v1071_v60  ;;  %2154 = vmatprep.subr.bf16.mxu1 %v2848_v0 }
 0x326   : > { %1312 = vmatprep.mubr.bf16.mxu0 %v1076_v63 }
 0x327   : > { %1961 = vmatmul.mubr.msk.bf16.vlgmr.msra.gmra.mrb[8].mxu0 %vm1959_vm11, %v1960_v52  ;;  %2155 = vmatpush3.bf16.msra.mxu1 %v2399_v62  ;;  %v1962_v52 = vld [vmem:[#allocation19] ss:$0 sm:$0xff] }
 0x328   : > { %2064 = vmatpush3.bf16.msra.mxu0 %v2400_v1  ;;  %2156 = vmatprep.subr.bf16.mxu1 %v2848_v0 }
 0x329   : > { %2065 = vmatprep.subr.bf16.mxu0 %v2401_v2 }
 0x32b   : > { %2157 = vmatpush3.bf16.msra.mxu1 %v2402_v3 }
 0x32c   : > { %2066 = vmatpush3.bf16.msra.mxu0 %v2403_v4  ;;  %2158 = vmatprep.subr.bf16.mxu1 %v2848_v0 }
 0x32d   : > { %2067 = vmatprep.subr.bf16.mxu0 %v2404_v5 }
 0x32f   : > { %2159 = vmatpush3.bf16.msra.mxu1 %v2405_v6 }
 0x330   : > { %2068 = vmatpush3.bf16.msra.mxu0 %v2406_v7  ;;  %2160 = vmatprep.subr.bf16.mxu1 %v2848_v0 }
 0x331   : > { %2069 = vmatprep.subr.bf16.mxu0 %v2407_v8 }
 0x333   : > { %2161 = vmatpush3.bf16.msra.mxu1 %v2408_v9 }
 0x334   : > { %2070 = vmatpush3.bf16.msra.mxu0 %v2409_v10  ;;  %2162 = vmatprep.subr.bf16.mxu1 %v2848_v0 }
 0x335   : > { %2071 = vmatprep.subr.bf16.mxu0 %v2410_v11 }
 0x337   : > { %2163 = vmatpush3.bf16.msra.mxu1 %v2411_v12 }
 0x338   : > { %2072 = vmatpush3.bf16.msra.mxu0 %v2412_v13  ;;  %2164 = vmatprep.subr.bf16.mxu1 %v2848_v0 }
 0x339   : > { %2073 = vmatprep.subr.bf16.mxu0 %v2413_v14 }
 0x33b   : > { %2165 = vmatpush3.bf16.msra.mxu1 %v2414_v15 }
 0x33c   : > { %2074 = vmatpush3.bf16.msra.mxu0 %v2415_v16  ;;  %2166 = vmatprep.subr.bf16.mxu1 %v2848_v0  ;;  %v1364_v0 = vadd.s32 4294967295, %v3313_v36 }
 0x33d   : > { %2075 = vmatprep.subr.bf16.mxu0 %v2416_v17 }
 0x33e   : > { %vm1366_vm12 = vcmp.ge.s32.totalorder %v1364_v0, 0 }
 0x33f   : > { %2167 = vmatpush3.bf16.msra.mxu1 %v2417_v18  ;;  %vm1987_vm14 = vmpackc.low %vm1369_vm13, %vm1366_vm12 }
 0x340   : > { %2076 = vmatpush3.bf16.msra.mxu0 %v2418_v19 }
 0x341   : > { %2077 = vmatprep.subr.bf16.mxu0 %v2419_v20 }
 0x344   : > { %2078 = vmatpush3.bf16.msra.mxu0 %v2420_v21 }
 0x3f5   : > { %v1355_v22 = vpop.f32.mrb[8].mxu1 }
 0x3f6   : > { %v2150_v23 = vpop.f32.mrb[9].mxu1 }
 0x3f7   : > { %v1358_v24 = vpop.f32.mrb[10].mxu1 }
 0x3f8   : > { %v2151_v25 = vpop.f32.mrb[11].mxu1 }
 0x3fa   : > { %v2048_v26 = vpop.f32.mrb[8].mxu0 }
 0x3fb   : > { %v2049_v28 = vpop.f32.mrb[9].mxu0 }
 0x3fc   : > { %v2050_v29 = vadd.f32 %v2049_v28, %v2048_v26  ;;  %v2051_v30 = vpop.f32.mrb[10].mxu0 }
 0x3fd   : > { %v2052_v31 = vpop.f32.mrb[11].mxu0 }
 0x3fe   : > { %v1315_v33 = vadd.f32 %v2050_v29, %v1934_v27  ;;  %v2053_v34 = vadd.f32 %v2052_v31, %v2051_v30 }
 0x400   : > { %v1356_v35 = vadd.f32 %v1355_v22, %v1315_v33  ;;  %v1318_v37 = vadd.f32 %v2053_v34, %v1934_v27 }
 0x402   : > { %v1359_v39 = vadd.f32 %v1358_v24, %v1318_v37  ;;  %v1376_v40 = vsel %vm1366_vm12, %v1356_v35, 0.0 }
 0x404   : > { %v1377_v41 = vsel %vm1369_vm13, %v1359_v39, 0.0  ;;  %v1988_v42 = vpack.c.bf16 %v1359_v39, %v1356_v35 }
 0x405   : > { %v1378_v43 = vpack.c.bf16 %v1377_v41, %v1376_v40 }
 0x407   : > { %v1388_v44 = vrot.slane %v1378_v43, 1  ;;  %v1382_v45 = vshll.u32 %v1378_v43, 16  ;;  %v1380_v46 = vshrl.u32 %v1378_v43, 16 }
 0x409   : > { %2169 = vmatmul.mubr.bf16.vlgmr.msra.gmra.mrb[12].mxu1 %v1388_v44  ;;  %v1384_v47 = vrot.slane %v1382_v45, 1 }
 0x40b   : > { %v1385_v36 = vor.u32 %v1384_v47, %v1380_v46 }
 0x40d   : > { %1621 = vmatprep.mubr.bf16.mxu0 %v1385_v36 }
 0x40e   : > { %1989 = vmatmul.mubr.msk.bf16.vlgmr.msra.gmra.mrb[12].mxu0 %vm1987_vm14, %v1988_v42 }
 0x4dc   : > { %v1663_v38 = vpop.f32.mrb[12].mxu1 }
 0x4dd   : > { %v2170_v48 = vpop.f32.mrb[13].mxu1 }
 0x4de   : > { %v1666_v49 = vpop.f32.mrb[14].mxu1 }
 0x4df   : > { %v2171_v50 = vpop.f32.mrb[15].mxu1 }
 0x4e1   : > { %v2079_v51 = vpop.f32.mrb[12].mxu0 }
 0x4e2   : > { %v2080_v53 = vpop.f32.mrb[13].mxu0 }
 0x4e3   : > { %v2081_v54 = vadd.f32 %v2080_v53, %v2079_v51  ;;  %v2082_v55 = vpop.f32.mrb[14].mxu0 }
 0x4e4   : > { %v2083_v56 = vpop.f32.mrb[15].mxu0 }
 0x4e5   : > { %v1624_v57 = vadd.f32 %v2081_v54, %v1962_v52 }
 0x4e7   : > { %v1664_v58 = vadd.f32 %v1663_v38, %v1624_v57 }
 0x4e9   : > { %v1676_v60 = vadd.f32 %v3341_v59, %v1664_v58 }
 0x4eb   : > { %v1677_v61 = vmax.f32 %v1676_v60, 0.0 }
 0x4ed   : > { %1678 = vst [vmem:[%s551_s28] sm:$0xff] %v1677_v61 }
 0x4ee   : > { %2744 = shalt.err (!%p2741_p8)
}
 0x4ef   : > { %s2745_s12 = scalar_lea.hbm %s3363_s15, 128  ;;  %s2749_s11 = scalar_lea.hbm %s3469_s1, 256 }
 0x4f0   : > { %p2746_p3 = scmp.ne.s32.totalorder %s3363_s15, %s2745_s12  ;;  %p2750_p13 = scmp.lt.u32.totalorder %s3363_s15, %s3469_s1 }
 0x4f1   : > { %p2751_p1 = scmp.lt.u32.totalorder %s2749_s11, %s2745_s12  ;;  %p2753_p2 = scmp.lt.u32.totalorder %s2745_s12, %s3363_s15 }
 0x4f2   : > { %p2747_p11 = pnand %p2746_p3, %p3470_p9 }
 0x4f3   : > { %p2752_p4 = por %p2751_p1, %p2750_p13 }
 0x4f4   : > { %p2748_p6 = pneg %p2747_p11 }
 0x4f5   : > { %p2754_p10 = por %p2753_p2, %p2752_p4 }
 0x4f7   : > { %p2755_p12 = pnand %p2754_p10, %p2748_p6 }
 0x4f9   : > { %2758 = shalt.err (!%p2755_p12)
}
 0x4fa   : > { %2222 = dma.vmem_to_hbm [thread:$0]  (%p3470_p9), %s3365_s13, 128, %s3363_s15, %s1680_s2  }
 0x4fb PF: > { %s1706_s3 = sand.u32 1, %s2813_s17   ;;  %p3471_p0 = scmp.ne.s32.totalorder %s3459_s29, 0 }
 0x4fc   : > { %p3472_p7 = scmp.ge.s32.totalorder %s2833_s22, 2  ;;  %s1707_s0 = scalar_lea.sflag [#allocation4], %s1706_s3 }
 0x4fe   : > { %p2260_p5 = pnand %p3472_p7, %p3471_p0 }
 0x500   : > { %2808 = dma.done.wait (!%p2260_p5), %s1707_s0, 128  }
 0x501   : > { %2810 = vsyncadd (!%p2260_p5), %s1707_s0, 4294967168  ;;  %s32_s22 = sadd.s32 1, %s2833_s22   ;;  %s3473_s17 = smov %s2817_s18 }
 0x502   : > { %p29_p8 = scmp.ge.s32.totalorder %s32_s22, 4   ;;  %s3474_s18 = smov %s2821_s19 }
 0x503   : > { %s3475_s19 = smov %s3208_s14  ;;  %s3476_s20 = smov %s2829_s21 }
 0x504   : > { %s3477_s21 = smov %s3479_s30  ;;  %31 = sbr.rel (!%p29_p8) target bundleno = 17 (0x11), region = 150 }
 0x50b   :  { %1712 = vsyncpa [#allocation3], 1 }
 0x50c   :  { %1714 = vsyncpa [#allocation3 + $0x1], 1 }
 0x50d   :  { %1715 = vsyncpa [#allocation6], 1 }
 0x50e   :  { %1716 = vsyncpa [#allocation9], 1 }
 0x50f   :  { %1717 = vsyncpa [#allocation12], 1 }
 0x510   :  { %1718 = vsyncpa [#allocation15], 1 }
 0x511   :  { %1719 = vsyncpa [#allocation18], 1 }
 0x512   :  { %1720 = vsyncpa [#allocation4], 1 }
 0x513   :  { %1722 = vsyncpa [#allocation4 + $0x1], 1 }

</bundles_post_ra>
